<compile_context>
chip_gen: v6e
topology: v6e:2x2x1
jax: 0.10.0
libtpu: 0.0.40
codegen_flags: <defaults>
</compile_context>

<pallas_src>
import functools

import jax
import jax.numpy as jnp
import numpy as np
from jax import lax
from jax.experimental import pallas as pl
from jax.experimental.pallas import tpu as pltpu


def _loss_kernel(p_ref, t_ref, out_ref, *, chunk, num_chunks):
    """p_ref: (9, r, 128) predictions, t_ref: (8, r, 128) targets (f32).
    out_ref: (1, 5, chunk, 128) resident per-core partial-sum planes."""
    step = pl.program_id(1)

    @pl.when(step == 0)
    def _init():
        out_ref[...] = jnp.zeros_like(out_ref)

    eps_sq = jnp.float32(1e-24)   # (1e-12)^2, matches F.normalize's eps
    half = jnp.float32(0.5)

    def body(j, carry):
        a_cls, a_dir, a_nrm, a_rad, a_lab = carry
        base = pl.multiple_of(j * chunk, chunk)

        def prow(k):
            return p_ref[k, pl.ds(base, chunk), :].astype(jnp.float32)

        def trow(k):
            return t_ref[k, pl.ds(base, chunk), :]

        logp0, logp1 = prow(0), prow(1)
        pd0, pd1, pd2 = prow(2), prow(3), prow(4)
        pn0, pn1, pn2 = prow(5), prow(6), prow(7)
        pr = prow(8)
        label = trow(0)                       # exact 0/1 floats
        td0, td1, td2 = trow(1), trow(2), trow(3)
        tnr0, tnr1, tnr2 = trow(4), trow(5), trow(6)
        tr = trow(7)

        # F.nll_loss gather specialised to C == 2: a lane-wise select.  Padded
        # lanes have label == 0 and logp0 == 0, so they contribute nothing.
        picked = jnp.where(label >= half, logp1, logp0)

        # F.normalize(x, dim=1) == x * rsqrt(max(||x||^2, eps^2)) (rsqrt fuses
        # the sqrt + reciprocal onto the EUP).
        ss_d = pd0 * pd0 + pd1 * pd1 + pd2 * pd2
        inv_d = lax.rsqrt(jnp.maximum(ss_d, eps_sq))
        ss_n = pn0 * pn0 + pn1 * pn1 + pn2 * pn2
        inv_nn = lax.rsqrt(jnp.maximum(ss_n, eps_sq))

        # min(||pdn - td||, ||pdn + td||) via ||a -/+ b||^2 = pp + tt -/+ 2 a.b
        pp = ss_d * inv_d * inv_d
        tt = td0 * td0 + td1 * td1 + td2 * td2
        dot = (pd0 * td0 + pd1 * td1 + pd2 * td2) * inv_d
        dir_term = jnp.sqrt(
            jnp.maximum(pp + tt - jnp.float32(2.0) * jnp.abs(dot), jnp.float32(0.0)))

        dn0 = pn0 * inv_nn - tnr0
        dn1 = pn1 * inv_nn - tnr1
        dn2 = pn2 * inv_nn - tnr2
        nrm_term = jnp.sqrt(dn0 * dn0 + dn1 * dn1 + dn2 * dn2)

        # Radius: target/1000, zeros -> 1e-4, A5 = 20; big + small merged.
        tr_s = tr * jnp.float32(1e-3)
        tr_s = jnp.where(tr_s == jnp.float32(0.0), jnp.float32(1e-4), tr_s)
        diff = jnp.abs(tr_s - pr)
        rad_term = diff + diff * pl.reciprocal(tr_s * jnp.float32(20.0), approx=False)

        return (a_cls + picked,
                a_dir + dir_term * label,
                a_nrm + nrm_term * label,
                a_rad + rad_term * label,
                a_lab + label)

    zero = jnp.zeros((chunk, 128), jnp.float32)
    a_cls, a_dir, a_nrm, a_rad, a_lab = lax.fori_loop(
        0, num_chunks, body, (zero, zero, zero, zero, zero),
        unroll=min(num_chunks, 8))

    # Pure VPU adds into the resident output block; no cross-lane reductions
    # and no scalar-unit dependency chain inside the grid loop.
    out_ref[0, 0] += a_cls
    out_ref[0, 1] += a_dir
    out_ref[0, 2] += a_nrm
    out_ref[0, 3] += a_rad
    out_ref[0, 4] += a_lab


def _round_up(x, m):
    return ((x + m - 1) // m) * m


def pipenet_get_loss(pred_label, pred_direction, pred_normal, pred_radius,
                     target_label, target_direction, target_normal,
                     target_radius, trans_feat=None, *, tile_n=32768):
    """JAX/Pallas equivalent of models.pipenet.get_loss.forward. trans_feat unused."""
    n, c = pred_label.shape
    if c != 2:
        raise ValueError("kernel is specialised to the 2-class pipe head (C == 2)")

    # Predictions travel in their own dtype (bf16 stays bf16 -> half the DMA
    # bytes); targets always travel in f32 (radius values up to ~50 and the
    # exact ==0 test must not be perturbed by a bf16 round-trip).
    pred_dtype = jnp.bfloat16 if pred_direction.dtype == jnp.bfloat16 else jnp.float32
    chunk = 16 if pred_dtype == jnp.bfloat16 else 8        # sublane tile of pred_dtype
    align = 128 * chunk
    tn = _round_up(min(int(tile_n), _round_up(n, align)), align)
    n_pad = _round_up(n, 2 * tn)                            # 2 = per-core split
    rows_total = n_pad // 128
    r = tn // 128
    tiles_per_core = (n_pad // tn) // 2
    num_chunks = r // chunk

    def planes(x, dtype):
        # (N,) or (N,k) -> (k, N_pad); the pad fuses into the concat operand
        # instead of being a separate full-slab copy.
        a = jnp.asarray(x).reshape(n, -1).astype(dtype)
        a = jnp.pad(a, ((0, n_pad - n), (0, 0)))
        return a.T

    pred_slab = jnp.concatenate([
        planes(pred_label, pred_dtype),        # 2 rows
        planes(pred_direction, pred_dtype),    # 3
        planes(pred_normal, pred_dtype),       # 3
        planes(pred_radius, pred_dtype),       # 1
    ], axis=0).reshape(9, rows_total, 128)

    tgt_slab = jnp.concatenate([
        planes(target_label, jnp.float32),     # 1
        planes(target_direction, jnp.float32), # 3
        planes(target_normal, jnp.float32),    # 3
        planes(target_radius, jnp.float32),    # 1
    ], axis=0).reshape(8, rows_total, 128)

    kernel = functools.partial(_loss_kernel, chunk=chunk, num_chunks=num_chunks)
    # ~2 MiB of blocks per step at tile_n=32768 (f32) -> x2 buffers fits the
    # default scoped-VMEM limit on v5e/v6e/v7x; no vmem_limit_bytes needed.
    partials = pl.pallas_call(
        kernel,
        out_shape=jax.ShapeDtypeStruct((2, 5, chunk, 128), jnp.float32),
        grid_spec=pltpu.PrefetchScalarGridSpec(
            num_scalar_prefetch=0,
            grid=(2, tiles_per_core),
            in_specs=[
                pl.BlockSpec((9, r, 128),
                             lambda c_, i: (0, c_ * tiles_per_core + i, 0)),
                pl.BlockSpec((8, r, 128),
                             lambda c_, i: (0, c_ * tiles_per_core + i, 0)),
            ],
            out_specs=pl.BlockSpec((1, 5, chunk, 128),
                                   lambda c_, i: (c_, 0, 0, 0)),
        ),
        compiler_params=pltpu.CompilerParams(
            dimension_semantics=("parallel", "arbitrary"),
        ),
    )(pred_slab, tgt_slab)

    # Combine the per-core partial-sum planes and finalise the four losses.
    sums = jnp.sum(partials, axis=(0, 2, 3))                # (5,)
    picked_sum, dir_sum, nrm_sum, rad_sum, label_sum = (
        sums[0], sums[1], sums[2], sums[3], sums[4])
    classification_loss = -picked_sum / jnp.float32(n)      # nll mean over N
    denom = jnp.where(label_sum == jnp.float32(0.0), jnp.float32(1.0), label_sum)
    return (classification_loss, dir_sum / denom, nrm_sum / denom, rad_sum / denom)


def _reference(pred_label, pred_direction, pred_normal, pred_radius,
               target_label, target_direction, target_normal, target_radius):
    """Pure-JAX reference mirroring the PyTorch code, for a correctness check."""
    n = pred_label.shape[0]
    picked = jnp.take_along_axis(pred_label, target_label.reshape(n, 1), axis=1)[:, 0]
    classification_loss = -jnp.mean(picked)

    def l2norm(x):
        return x / jnp.maximum(jnp.linalg.norm(x, axis=1, keepdims=True), 1e-12)

    pd = l2norm(pred_direction)
    pn = l2norm(pred_normal)
    lab = target_label.astype(jnp.float32)
    direction_loss = jnp.sum(jnp.minimum(jnp.linalg.norm(pd - target_direction, axis=1),
                                         jnp.linalg.norm(pd + target_direction, axis=1)) * lab)
    normal_loss = jnp.sum(jnp.linalg.norm(pn - target_normal, axis=1) * lab)
    tr = target_radius / 1000.0
    tr = jnp.where(tr == 0.0, 1e-4, tr)
    diff = jnp.abs(tr - pred_radius.reshape(-1))
    radius_loss = jnp.sum(diff * lab) + jnp.sum(diff / (tr * 20.0) * lab)
    s = lab.sum()
    denom = jnp.where(s == 0.0, 1.0, s)
    return classification_loss, direction_loss / denom, normal_loss / denom, radius_loss / denom


if __name__ == "__main__":
    key = jax.random.PRNGKey(0)
    k1, k2, k3, k4, k5, k6, k7, k8 = jax.random.split(key, 8)

    N, C = 2500, 2  # N points, 2 classes (pipe / not-pipe)

    logits = jax.random.normal(k1, (N, C), dtype=jnp.float32)
    pred_label = jax.nn.log_softmax(logits, axis=1)                 # nll_loss expects log-probs
    pred_direction = jax.random.normal(k2, (N, 3), dtype=jnp.float32)
    pred_normal = jax.random.normal(k3, (N, 3), dtype=jnp.float32)
    pred_radius = jax.random.uniform(k4, (N, 1), dtype=jnp.float32, minval=0.0, maxval=0.05)

    target_label = jax.random.bernoulli(k5, 0.5, (N,)).astype(jnp.int32)
    target_direction = jax.random.normal(k6, (N, 3), dtype=jnp.float32)
    target_direction = target_direction / jnp.linalg.norm(target_direction, axis=1, keepdims=True)
    target_normal = jax.random.normal(k7, (N, 3), dtype=jnp.float32)
    target_normal = target_normal / jnp.linalg.norm(target_normal, axis=1, keepdims=True)
    target_radius = jax.random.uniform(k8, (N,), dtype=jnp.float32, minval=0.0, maxval=50.0)
    target_radius = target_radius.at[::7].set(0.0)                  # exercise the ==0 -> 1e-4 path

    trans_feat = jnp.zeros((N, 3, 3), dtype=jnp.float32)            # unused, as in PyTorch

    refs = _reference(pred_label, pred_direction, pred_normal, pred_radius,
                      target_label, target_direction, target_normal, target_radius)

    # jit so the slab construction fuses into a single pass feeding the kernel.
    run = jax.jit(pipenet_get_loss, static_argnames=("tile_n",))

    # Exercise the single-tile-per-core path and the multi-tile accumulation path.
    for tile in (32768, 1024):
        outs = run(pred_label, pred_direction, pred_normal, pred_radius,
                   target_label, target_direction, target_normal,
                   target_radius, trans_feat, tile_n=tile)
        outs = jax.block_until_ready(outs)
        for o, r_ in zip(outs, refs):
            np.testing.assert_allclose(np.asarray(o), np.asarray(r_), rtol=1e-5, atol=1e-5)

    print("KERNEL_OK")
</pallas_src>

<mosaic_0001>
module attributes {stable_mosaic.version = 11 : i64} {
  func.func @_loss_kernel(%arg0: i32, %arg1: i32, %arg2: memref<9x24x128xf32, #tpu.memory_space<vmem>>, %arg3: memref<8x24x128xf32, #tpu.memory_space<vmem>>, %arg4: memref<1x5x8x128xf32, #tpu.memory_space<vmem>>) attributes {dimension_semantics = [#tpu.dimension_semantics<parallel>, #tpu.dimension_semantics<arbitrary>], iteration_bounds = array<i64: 2, 1>, scalar_prefetch = 0 : i64, scratch_operands = 0 : i64, tpu.core_type = #tpu.core_type<tc>, window_params = [{transform_indices = @transform_0, window_bounds = array<i64: 9, 24, 128>}, {transform_indices = @transform_1, window_bounds = array<i64: 8, 24, 128>}, {transform_indices = @transform_2, window_bounds = array<i64: 1, 5, 8, 128>}]} {
    %c0_i32 = arith.constant 0 : i32
    %0 = arith.cmpi eq, %arg1, %c0_i32 : i32
    %1 = arith.extui %0 : i1 to i32
    %c0_i32_0 = arith.constant 0 : i32
    %2 = arith.cmpi ne, %1, %c0_i32_0 : i32
    scf.if %2 {
      %cst_157 = arith.constant 0.000000e+00 : f32
      %412 = vector.broadcast %cst_157 : f32 to vector<1x5x8x128xf32>
      %c0_158 = arith.constant 0 : index
      %c0_159 = arith.constant 0 : index
      %c0_160 = arith.constant 0 : index
      %c0_161 = arith.constant 0 : index
      %413 = vector.load %arg4[%c0_158, %c0_159, %c0_160, %c0_161] : memref<1x5x8x128xf32, #tpu.memory_space<vmem>>, vector<1x5x8x128xf32>
      tpu.vector_store %arg4[%c0_158, %c0_159, %c0_160, %c0_161], %412 {strides = array<i32>} : memref<1x5x8x128xf32, #tpu.memory_space<vmem>>, vector<1x5x8x128xf32>,
    } else {
    }
    %cst = arith.constant 0.000000e+00 : f32
    %3 = vector.broadcast %cst : f32 to vector<8x128xf32>
    %cst_1 = arith.constant 5.000000e-01 : f32
    %cst_2 = arith.constant 1.000000e-24 : f32
    %c0_i32_3 = arith.constant 0 : i32
    %c8_i32 = arith.constant 8 : i32
    %4 = arith.muli %c0_i32_3, %c8_i32 : i32
    %5 = tpu.assume_multiple %4, 8 : i32
    %c0 = arith.constant 0 : index
    %6 = arith.index_cast %5 : i32 to index
    %c0_4 = arith.constant 0 : index
    %7 = vector.load %arg2[%c0, %6, %c0_4] : memref<9x24x128xf32, #tpu.memory_space<vmem>>, vector<1x8x128xf32>
    %8 = vector.shape_cast %7 : vector<1x8x128xf32> to vector<8x128xf32>
    %c1 = arith.constant 1 : index
    %9 = arith.index_cast %5 : i32 to index
    %c0_5 = arith.constant 0 : index
    %10 = vector.load %arg2[%c1, %9, %c0_5] : memref<9x24x128xf32, #tpu.memory_space<vmem>>, vector<1x8x128xf32>
    %11 = vector.shape_cast %10 : vector<1x8x128xf32> to vector<8x128xf32>
    %c2 = arith.constant 2 : index
    %12 = arith.index_cast %5 : i32 to index
    %c0_6 = arith.constant 0 : index
    %13 = vector.load %arg2[%c2, %12, %c0_6] : memref<9x24x128xf32, #tpu.memory_space<vmem>>, vector<1x8x128xf32>
    %14 = vector.shape_cast %13 : vector<1x8x128xf32> to vector<8x128xf32>
    %c3 = arith.constant 3 : index
    %15 = arith.index_cast %5 : i32 to index
    %c0_7 = arith.constant 0 : index
    %16 = vector.load %arg2[%c3, %15, %c0_7] : memref<9x24x128xf32, #tpu.memory_space<vmem>>, vector<1x8x128xf32>
    %17 = vector.shape_cast %16 : vector<1x8x128xf32> to vector<8x128xf32>
    %c4 = arith.constant 4 : index
    %18 = arith.index_cast %5 : i32 to index
    %c0_8 = arith.constant 0 : index
    %19 = vector.load %arg2[%c4, %18, %c0_8] : memref<9x24x128xf32, #tpu.memory_space<vmem>>, vector<1x8x128xf32>
    %20 = vector.shape_cast %19 : vector<1x8x128xf32> to vector<8x128xf32>
    %c5 = arith.constant 5 : index
    %21 = arith.index_cast %5 : i32 to index
    %c0_9 = arith.constant 0 : index
    %22 = vector.load %arg2[%c5, %21, %c0_9] : memref<9x24x128xf32, #tpu.memory_space<vmem>>, vector<1x8x128xf32>
    %23 = vector.shape_cast %22 : vector<1x8x128xf32> to vector<8x128xf32>
    %c6 = arith.constant 6 : index
    %24 = arith.index_cast %5 : i32 to index
    %c0_10 = arith.constant 0 : index
    %25 = vector.load %arg2[%c6, %24, %c0_10] : memref<9x24x128xf32, #tpu.memory_space<vmem>>, vector<1x8x128xf32>
    %26 = vector.shape_cast %25 : vector<1x8x128xf32> to vector<8x128xf32>
    %c7 = arith.constant 7 : index
    %27 = arith.index_cast %5 : i32 to index
    %c0_11 = arith.constant 0 : index
    %28 = vector.load %arg2[%c7, %27, %c0_11] : memref<9x24x128xf32, #tpu.memory_space<vmem>>, vector<1x8x128xf32>
    %29 = vector.shape_cast %28 : vector<1x8x128xf32> to vector<8x128xf32>
    %c8 = arith.constant 8 : index
    %30 = arith.index_cast %5 : i32 to index
    %c0_12 = arith.constant 0 : index
    %31 = vector.load %arg2[%c8, %30, %c0_12] : memref<9x24x128xf32, #tpu.memory_space<vmem>>, vector<1x8x128xf32>
    %32 = vector.shape_cast %31 : vector<1x8x128xf32> to vector<8x128xf32>
    %c0_13 = arith.constant 0 : index
    %33 = arith.index_cast %5 : i32 to index
    %c0_14 = arith.constant 0 : index
    %34 = vector.load %arg3[%c0_13, %33, %c0_14] : memref<8x24x128xf32, #tpu.memory_space<vmem>>, vector<1x8x128xf32>
    %35 = vector.shape_cast %34 : vector<1x8x128xf32> to vector<8x128xf32>
    %c1_15 = arith.constant 1 : index
    %36 = arith.index_cast %5 : i32 to index
    %c0_16 = arith.constant 0 : index
    %37 = vector.load %arg3[%c1_15, %36, %c0_16] : memref<8x24x128xf32, #tpu.memory_space<vmem>>, vector<1x8x128xf32>
    %38 = vector.shape_cast %37 : vector<1x8x128xf32> to vector<8x128xf32>
    %c2_17 = arith.constant 2 : index
    %39 = arith.index_cast %5 : i32 to index
    %c0_18 = arith.constant 0 : index
    %40 = vector.load %arg3[%c2_17, %39, %c0_18] : memref<8x24x128xf32, #tpu.memory_space<vmem>>, vector<1x8x128xf32>
    %41 = vector.shape_cast %40 : vector<1x8x128xf32> to vector<8x128xf32>
    %c3_19 = arith.constant 3 : index
    %42 = arith.index_cast %5 : i32 to index
    %c0_20 = arith.constant 0 : index
    %43 = vector.load %arg3[%c3_19, %42, %c0_20] : memref<8x24x128xf32, #tpu.memory_space<vmem>>, vector<1x8x128xf32>
    %44 = vector.shape_cast %43 : vector<1x8x128xf32> to vector<8x128xf32>
    %c4_21 = arith.constant 4 : index
    %45 = arith.index_cast %5 : i32 to index
    %c0_22 = arith.constant 0 : index
    %46 = vector.load %arg3[%c4_21, %45, %c0_22] : memref<8x24x128xf32, #tpu.memory_space<vmem>>, vector<1x8x128xf32>
    %47 = vector.shape_cast %46 : vector<1x8x128xf32> to vector<8x128xf32>
    %c5_23 = arith.constant 5 : index
    %48 = arith.index_cast %5 : i32 to index
    %c0_24 = arith.constant 0 : index
    %49 = vector.load %arg3[%c5_23, %48, %c0_24] : memref<8x24x128xf32, #tpu.memory_space<vmem>>, vector<1x8x128xf32>
    %50 = vector.shape_cast %49 : vector<1x8x128xf32> to vector<8x128xf32>
    %c6_25 = arith.constant 6 : index
    %51 = arith.index_cast %5 : i32 to index
    %c0_26 = arith.constant 0 : index
    %52 = vector.load %arg3[%c6_25, %51, %c0_26] : memref<8x24x128xf32, #tpu.memory_space<vmem>>, vector<1x8x128xf32>
    %53 = vector.shape_cast %52 : vector<1x8x128xf32> to vector<8x128xf32>
    %c7_27 = arith.constant 7 : index
    %54 = arith.index_cast %5 : i32 to index
    %c0_28 = arith.constant 0 : index
    %55 = vector.load %arg3[%c7_27, %54, %c0_28] : memref<8x24x128xf32, #tpu.memory_space<vmem>>, vector<1x8x128xf32>
    %56 = vector.shape_cast %55 : vector<1x8x128xf32> to vector<8x128xf32>
    %57 = vector.broadcast %cst_1 : f32 to vector<8x128xf32>
    %58 = arith.cmpf oge, %35, %57 : vector<8x128xf32>
    %59 = arith.select %58, %11, %8 : vector<8x128xi1>, vector<8x128xf32>
    %60 = arith.mulf %14, %14 : vector<8x128xf32>
    %61 = arith.mulf %17, %17 : vector<8x128xf32>
    %62 = arith.addf %60, %61 : vector<8x128xf32>
    %63 = arith.mulf %20, %20 : vector<8x128xf32>
    %64 = arith.addf %62, %63 : vector<8x128xf32>
    %65 = vector.broadcast %cst_2 : f32 to vector<8x128xf32>
    %66 = arith.maximumf %64, %65 : vector<8x128xf32>
    %67 = math.rsqrt %66 : vector<8x128xf32>
    %68 = arith.mulf %23, %23 : vector<8x128xf32>
    %69 = arith.mulf %26, %26 : vector<8x128xf32>
    %70 = arith.addf %68, %69 : vector<8x128xf32>
    %71 = arith.mulf %29, %29 : vector<8x128xf32>
    %72 = arith.addf %70, %71 : vector<8x128xf32>
    %73 = vector.broadcast %cst_2 : f32 to vector<8x128xf32>
    %74 = arith.maximumf %72, %73 : vector<8x128xf32>
    %75 = math.rsqrt %74 : vector<8x128xf32>
    %76 = arith.mulf %64, %67 : vector<8x128xf32>
    %77 = arith.mulf %76, %67 : vector<8x128xf32>
    %78 = arith.mulf %38, %38 : vector<8x128xf32>
    %79 = arith.mulf %41, %41 : vector<8x128xf32>
    %80 = arith.addf %78, %79 : vector<8x128xf32>
    %81 = arith.mulf %44, %44 : vector<8x128xf32>
    %82 = arith.addf %80, %81 : vector<8x128xf32>
    %83 = arith.mulf %14, %38 : vector<8x128xf32>
    %84 = arith.mulf %17, %41 : vector<8x128xf32>
    %85 = arith.addf %83, %84 : vector<8x128xf32>
    %86 = arith.mulf %20, %44 : vector<8x128xf32>
    %87 = arith.addf %85, %86 : vector<8x128xf32>
    %88 = arith.mulf %87, %67 : vector<8x128xf32>
    %89 = arith.addf %77, %82 : vector<8x128xf32>
    %90 = math.absf %88 : vector<8x128xf32>
    %cst_29 = arith.constant 2.000000e+00 : f32
    %91 = vector.broadcast %cst_29 : f32 to vector<8x128xf32>
    %92 = arith.mulf %91, %90 : vector<8x128xf32>
    %93 = arith.subf %89, %92 : vector<8x128xf32>
    %cst_30 = arith.constant 0.000000e+00 : f32
    %94 = vector.broadcast %cst_30 : f32 to vector<8x128xf32>
    %95 = arith.maximumf %93, %94 : vector<8x128xf32>
    %96 = math.sqrt %95 : vector<8x128xf32>
    %97 = arith.mulf %23, %75 : vector<8x128xf32>
    %98 = arith.subf %97, %47 : vector<8x128xf32>
    %99 = arith.mulf %26, %75 : vector<8x128xf32>
    %100 = arith.subf %99, %50 : vector<8x128xf32>
    %101 = arith.mulf %29, %75 : vector<8x128xf32>
    %102 = arith.subf %101, %53 : vector<8x128xf32>
    %103 = arith.mulf %98, %98 : vector<8x128xf32>
    %104 = arith.mulf %100, %100 : vector<8x128xf32>
    %105 = arith.addf %103, %104 : vector<8x128xf32>
    %106 = arith.mulf %102, %102 : vector<8x128xf32>
    %107 = arith.addf %105, %106 : vector<8x128xf32>
    %108 = math.sqrt %107 : vector<8x128xf32>
    %cst_31 = arith.constant 1.000000e-03 : f32
    %109 = vector.broadcast %cst_31 : f32 to vector<8x128xf32>
    %110 = arith.mulf %56, %109 : vector<8x128xf32>
    %cst_32 = arith.constant 0.000000e+00 : f32
    %111 = vector.broadcast %cst_32 : f32 to vector<8x128xf32>
    %112 = arith.cmpf oeq, %110, %111 : vector<8x128xf32>
    %cst_33 = arith.constant 9.99999974E-5 : f32
    %113 = vector.broadcast %cst_33 : f32 to vector<8x128xf32>
    %114 = arith.select %112, %113, %110 : vector<8x128xi1>, vector<8x128xf32>
    %115 = arith.subf %114, %32 : vector<8x128xf32>
    %116 = math.absf %115 : vector<8x128xf32>
    %cst_34 = arith.constant 2.000000e+01 : f32
    %117 = vector.broadcast %cst_34 : f32 to vector<8x128xf32>
    %118 = arith.mulf %114, %117 : vector<8x128xf32>
    %119 = tpu.reciprocal %118 : vector<8x128xf32> -> vector<8x128xf32>
    %120 = arith.mulf %116, %119 : vector<8x128xf32>
    %121 = arith.addf %116, %120 : vector<8x128xf32>
    %122 = arith.addf %3, %59 : vector<8x128xf32>
    %123 = arith.mulf %96, %35 : vector<8x128xf32>
    %124 = arith.addf %3, %123 : vector<8x128xf32>
    %125 = arith.mulf %108, %35 : vector<8x128xf32>
    %126 = arith.addf %3, %125 : vector<8x128xf32>
    %127 = arith.mulf %121, %35 : vector<8x128xf32>
    %128 = arith.addf %3, %127 : vector<8x128xf32>
    %129 = arith.addf %3, %35 : vector<8x128xf32>
    %c1_i32 = arith.constant 1 : i32
    %c8_i32_35 = arith.constant 8 : i32
    %130 = arith.muli %c1_i32, %c8_i32_35 : i32
    %131 = tpu.assume_multiple %130, 8 : i32
    %c0_36 = arith.constant 0 : index
    %132 = arith.index_cast %131 : i32 to index
    %c0_37 = arith.constant 0 : index
    %133 = vector.load %arg2[%c0_36, %132, %c0_37] : memref<9x24x128xf32, #tpu.memory_space<vmem>>, vector<1x8x128xf32>
    %134 = vector.shape_cast %133 : vector<1x8x128xf32> to vector<8x128xf32>
    %c1_38 = arith.constant 1 : index
    %135 = arith.index_cast %131 : i32 to index
    %c0_39 = arith.constant 0 : index
    %136 = vector.load %arg2[%c1_38, %135, %c0_39] : memref<9x24x128xf32, #tpu.memory_space<vmem>>, vector<1x8x128xf32>
    %137 = vector.shape_cast %136 : vector<1x8x128xf32> to vector<8x128xf32>
    %c2_40 = arith.constant 2 : index
    %138 = arith.index_cast %131 : i32 to index
    %c0_41 = arith.constant 0 : index
    %139 = vector.load %arg2[%c2_40, %138, %c0_41] : memref<9x24x128xf32, #tpu.memory_space<vmem>>, vector<1x8x128xf32>
    %140 = vector.shape_cast %139 : vector<1x8x128xf32> to vector<8x128xf32>
    %c3_42 = arith.constant 3 : index
    %141 = arith.index_cast %131 : i32 to index
    %c0_43 = arith.constant 0 : index
    %142 = vector.load %arg2[%c3_42, %141, %c0_43] : memref<9x24x128xf32, #tpu.memory_space<vmem>>, vector<1x8x128xf32>
    %143 = vector.shape_cast %142 : vector<1x8x128xf32> to vector<8x128xf32>
    %c4_44 = arith.constant 4 : index
    %144 = arith.index_cast %131 : i32 to index
    %c0_45 = arith.constant 0 : index
    %145 = vector.load %arg2[%c4_44, %144, %c0_45] : memref<9x24x128xf32, #tpu.memory_space<vmem>>, vector<1x8x128xf32>
    %146 = vector.shape_cast %145 : vector<1x8x128xf32> to vector<8x128xf32>
    %c5_46 = arith.constant 5 : index
    %147 = arith.index_cast %131 : i32 to index
    %c0_47 = arith.constant 0 : index
    %148 = vector.load %arg2[%c5_46, %147, %c0_47] : memref<9x24x128xf32, #tpu.memory_space<vmem>>, vector<1x8x128xf32>
    %149 = vector.shape_cast %148 : vector<1x8x128xf32> to vector<8x128xf32>
    %c6_48 = arith.constant 6 : index
    %150 = arith.index_cast %131 : i32 to index
    %c0_49 = arith.constant 0 : index
    %151 = vector.load %arg2[%c6_48, %150, %c0_49] : memref<9x24x128xf32, #tpu.memory_space<vmem>>, vector<1x8x128xf32>
    %152 = vector.shape_cast %151 : vector<1x8x128xf32> to vector<8x128xf32>
    %c7_50 = arith.constant 7 : index
    %153 = arith.index_cast %131 : i32 to index
    %c0_51 = arith.constant 0 : index
    %154 = vector.load %arg2[%c7_50, %153, %c0_51] : memref<9x24x128xf32, #tpu.memory_space<vmem>>, vector<1x8x128xf32>
    %155 = vector.shape_cast %154 : vector<1x8x128xf32> to vector<8x128xf32>
    %c8_52 = arith.constant 8 : index
    %156 = arith.index_cast %131 : i32 to index
    %c0_53 = arith.constant 0 : index
    %157 = vector.load %arg2[%c8_52, %156, %c0_53] : memref<9x24x128xf32, #tpu.memory_space<vmem>>, vector<1x8x128xf32>
    %158 = vector.shape_cast %157 : vector<1x8x128xf32> to vector<8x128xf32>
    %c0_54 = arith.constant 0 : index
    %159 = arith.index_cast %131 : i32 to index
    %c0_55 = arith.constant 0 : index
    %160 = vector.load %arg3[%c0_54, %159, %c0_55] : memref<8x24x128xf32, #tpu.memory_space<vmem>>, vector<1x8x128xf32>
    %161 = vector.shape_cast %160 : vector<1x8x128xf32> to vector<8x128xf32>
    %c1_56 = arith.constant 1 : index
    %162 = arith.index_cast %131 : i32 to index
    %c0_57 = arith.constant 0 : index
    %163 = vector.load %arg3[%c1_56, %162, %c0_57] : memref<8x24x128xf32, #tpu.memory_space<vmem>>, vector<1x8x128xf32>
    %164 = vector.shape_cast %163 : vector<1x8x128xf32> to vector<8x128xf32>
    %c2_58 = arith.constant 2 : index
    %165 = arith.index_cast %131 : i32 to index
    %c0_59 = arith.constant 0 : index
    %166 = vector.load %arg3[%c2_58, %165, %c0_59] : memref<8x24x128xf32, #tpu.memory_space<vmem>>, vector<1x8x128xf32>
    %167 = vector.shape_cast %166 : vector<1x8x128xf32> to vector<8x128xf32>
    %c3_60 = arith.constant 3 : index
    %168 = arith.index_cast %131 : i32 to index
    %c0_61 = arith.constant 0 : index
    %169 = vector.load %arg3[%c3_60, %168, %c0_61] : memref<8x24x128xf32, #tpu.memory_space<vmem>>, vector<1x8x128xf32>
    %170 = vector.shape_cast %169 : vector<1x8x128xf32> to vector<8x128xf32>
    %c4_62 = arith.constant 4 : index
    %171 = arith.index_cast %131 : i32 to index
    %c0_63 = arith.constant 0 : index
    %172 = vector.load %arg3[%c4_62, %171, %c0_63] : memref<8x24x128xf32, #tpu.memory_space<vmem>>, vector<1x8x128xf32>
    %173 = vector.shape_cast %172 : vector<1x8x128xf32> to vector<8x128xf32>
    %c5_64 = arith.constant 5 : index
    %174 = arith.index_cast %131 : i32 to index
    %c0_65 = arith.constant 0 : index
    %175 = vector.load %arg3[%c5_64, %174, %c0_65] : memref<8x24x128xf32, #tpu.memory_space<vmem>>, vector<1x8x128xf32>
    %176 = vector.shape_cast %175 : vector<1x8x128xf32> to vector<8x128xf32>
    %c6_66 = arith.constant 6 : index
    %177 = arith.index_cast %131 : i32 to index
    %c0_67 = arith.constant 0 : index
    %178 = vector.load %arg3[%c6_66, %177, %c0_67] : memref<8x24x128xf32, #tpu.memory_space<vmem>>, vector<1x8x128xf32>
    %179 = vector.shape_cast %178 : vector<1x8x128xf32> to vector<8x128xf32>
    %c7_68 = arith.constant 7 : index
    %180 = arith.index_cast %131 : i32 to index
    %c0_69 = arith.constant 0 : index
    %181 = vector.load %arg3[%c7_68, %180, %c0_69] : memref<8x24x128xf32, #tpu.memory_space<vmem>>, vector<1x8x128xf32>
    %182 = vector.shape_cast %181 : vector<1x8x128xf32> to vector<8x128xf32>
    %183 = vector.broadcast %cst_1 : f32 to vector<8x128xf32>
    %184 = arith.cmpf oge, %161, %183 : vector<8x128xf32>
    %185 = arith.select %184, %137, %134 : vector<8x128xi1>, vector<8x128xf32>
    %186 = arith.mulf %140, %140 : vector<8x128xf32>
    %187 = arith.mulf %143, %143 : vector<8x128xf32>
    %188 = arith.addf %186, %187 : vector<8x128xf32>
    %189 = arith.mulf %146, %146 : vector<8x128xf32>
    %190 = arith.addf %188, %189 : vector<8x128xf32>
    %191 = vector.broadcast %cst_2 : f32 to vector<8x128xf32>
    %192 = arith.maximumf %190, %191 : vector<8x128xf32>
    %193 = math.rsqrt %192 : vector<8x128xf32>
    %194 = arith.mulf %149, %149 : vector<8x128xf32>
    %195 = arith.mulf %152, %152 : vector<8x128xf32>
    %196 = arith.addf %194, %195 : vector<8x128xf32>
    %197 = arith.mulf %155, %155 : vector<8x128xf32>
    %198 = arith.addf %196, %197 : vector<8x128xf32>
    %199 = vector.broadcast %cst_2 : f32 to vector<8x128xf32>
    %200 = arith.maximumf %198, %199 : vector<8x128xf32>
    %201 = math.rsqrt %200 : vector<8x128xf32>
    %202 = arith.mulf %190, %193 : vector<8x128xf32>
    %203 = arith.mulf %202, %193 : vector<8x128xf32>
    %204 = arith.mulf %164, %164 : vector<8x128xf32>
    %205 = arith.mulf %167, %167 : vector<8x128xf32>
    %206 = arith.addf %204, %205 : vector<8x128xf32>
    %207 = arith.mulf %170, %170 : vector<8x128xf32>
    %208 = arith.addf %206, %207 : vector<8x128xf32>
    %209 = arith.mulf %140, %164 : vector<8x128xf32>
    %210 = arith.mulf %143, %167 : vector<8x128xf32>
    %211 = arith.addf %209, %210 : vector<8x128xf32>
    %212 = arith.mulf %146, %170 : vector<8x128xf32>
    %213 = arith.addf %211, %212 : vector<8x128xf32>
    %214 = arith.mulf %213, %193 : vector<8x128xf32>
    %215 = arith.addf %203, %208 : vector<8x128xf32>
    %216 = math.absf %214 : vector<8x128xf32>
    %cst_70 = arith.constant 2.000000e+00 : f32
    %217 = vector.broadcast %cst_70 : f32 to vector<8x128xf32>
    %218 = arith.mulf %217, %216 : vector<8x128xf32>
    %219 = arith.subf %215, %218 : vector<8x128xf32>
    %cst_71 = arith.constant 0.000000e+00 : f32
    %220 = vector.broadcast %cst_71 : f32 to vector<8x128xf32>
    %221 = arith.maximumf %219, %220 : vector<8x128xf32>
    %222 = math.sqrt %221 : vector<8x128xf32>
    %223 = arith.mulf %149, %201 : vector<8x128xf32>
    %224 = arith.subf %223, %173 : vector<8x128xf32>
    %225 = arith.mulf %152, %201 : vector<8x128xf32>
    %226 = arith.subf %225, %176 : vector<8x128xf32>
    %227 = arith.mulf %155, %201 : vector<8x128xf32>
    %228 = arith.subf %227, %179 : vector<8x128xf32>
    %229 = arith.mulf %224, %224 : vector<8x128xf32>
    %230 = arith.mulf %226, %226 : vector<8x128xf32>
    %231 = arith.addf %229, %230 : vector<8x128xf32>
    %232 = arith.mulf %228, %228 : vector<8x128xf32>
    %233 = arith.addf %231, %232 : vector<8x128xf32>
    %234 = math.sqrt %233 : vector<8x128xf32>
    %cst_72 = arith.constant 1.000000e-03 : f32
    %235 = vector.broadcast %cst_72 : f32 to vector<8x128xf32>
    %236 = arith.mulf %182, %235 : vector<8x128xf32>
    %cst_73 = arith.constant 0.000000e+00 : f32
    %237 = vector.broadcast %cst_73 : f32 to vector<8x128xf32>
    %238 = arith.cmpf oeq, %236, %237 : vector<8x128xf32>
    %cst_74 = arith.constant 9.99999974E-5 : f32
    %239 = vector.broadcast %cst_74 : f32 to vector<8x128xf32>
    %240 = arith.select %238, %239, %236 : vector<8x128xi1>, vector<8x128xf32>
    %241 = arith.subf %240, %158 : vector<8x128xf32>
    %242 = math.absf %241 : vector<8x128xf32>
    %cst_75 = arith.constant 2.000000e+01 : f32
    %243 = vector.broadcast %cst_75 : f32 to vector<8x128xf32>
    %244 = arith.mulf %240, %243 : vector<8x128xf32>
    %245 = tpu.reciprocal %244 : vector<8x128xf32> -> vector<8x128xf32>
    %246 = arith.mulf %242, %245 : vector<8x128xf32>
    %247 = arith.addf %242, %246 : vector<8x128xf32>
    %248 = arith.addf %122, %185 : vector<8x128xf32>
    %249 = arith.mulf %222, %161 : vector<8x128xf32>
    %250 = arith.addf %124, %249 : vector<8x128xf32>
    %251 = arith.mulf %234, %161 : vector<8x128xf32>
    %252 = arith.addf %126, %251 : vector<8x128xf32>
    %253 = arith.mulf %247, %161 : vector<8x128xf32>
    %254 = arith.addf %128, %253 : vector<8x128xf32>
    %255 = arith.addf %129, %161 : vector<8x128xf32>
    %c2_i32 = arith.constant 2 : i32
    %c8_i32_76 = arith.constant 8 : i32
    %256 = arith.muli %c2_i32, %c8_i32_76 : i32
    %257 = tpu.assume_multiple %256, 8 : i32
    %c0_77 = arith.constant 0 : index
    %258 = arith.index_cast %257 : i32 to index
    %c0_78 = arith.constant 0 : index
    %259 = vector.load %arg2[%c0_77, %258, %c0_78] : memref<9x24x128xf32, #tpu.memory_space<vmem>>, vector<1x8x128xf32>
    %260 = vector.shape_cast %259 : vector<1x8x128xf32> to vector<8x128xf32>
    %c1_79 = arith.constant 1 : index
    %261 = arith.index_cast %257 : i32 to index
    %c0_80 = arith.constant 0 : index
    %262 = vector.load %arg2[%c1_79, %261, %c0_80] : memref<9x24x128xf32, #tpu.memory_space<vmem>>, vector<1x8x128xf32>
    %263 = vector.shape_cast %262 : vector<1x8x128xf32> to vector<8x128xf32>
    %c2_81 = arith.constant 2 : index
    %264 = arith.index_cast %257 : i32 to index
    %c0_82 = arith.constant 0 : index
    %265 = vector.load %arg2[%c2_81, %264, %c0_82] : memref<9x24x128xf32, #tpu.memory_space<vmem>>, vector<1x8x128xf32>
    %266 = vector.shape_cast %265 : vector<1x8x128xf32> to vector<8x128xf32>
    %c3_83 = arith.constant 3 : index
    %267 = arith.index_cast %257 : i32 to index
    %c0_84 = arith.constant 0 : index
    %268 = vector.load %arg2[%c3_83, %267, %c0_84] : memref<9x24x128xf32, #tpu.memory_space<vmem>>, vector<1x8x128xf32>
    %269 = vector.shape_cast %268 : vector<1x8x128xf32> to vector<8x128xf32>
    %c4_85 = arith.constant 4 : index
    %270 = arith.index_cast %257 : i32 to index
    %c0_86 = arith.constant 0 : index
    %271 = vector.load %arg2[%c4_85, %270, %c0_86] : memref<9x24x128xf32, #tpu.memory_space<vmem>>, vector<1x8x128xf32>
    %272 = vector.shape_cast %271 : vector<1x8x128xf32> to vector<8x128xf32>
    %c5_87 = arith.constant 5 : index
    %273 = arith.index_cast %257 : i32 to index
    %c0_88 = arith.constant 0 : index
    %274 = vector.load %arg2[%c5_87, %273, %c0_88] : memref<9x24x128xf32, #tpu.memory_space<vmem>>, vector<1x8x128xf32>
    %275 = vector.shape_cast %274 : vector<1x8x128xf32> to vector<8x128xf32>
    %c6_89 = arith.constant 6 : index
    %276 = arith.index_cast %257 : i32 to index
    %c0_90 = arith.constant 0 : index
    %277 = vector.load %arg2[%c6_89, %276, %c0_90] : memref<9x24x128xf32, #tpu.memory_space<vmem>>, vector<1x8x128xf32>
    %278 = vector.shape_cast %277 : vector<1x8x128xf32> to vector<8x128xf32>
    %c7_91 = arith.constant 7 : index
    %279 = arith.index_cast %257 : i32 to index
    %c0_92 = arith.constant 0 : index
    %280 = vector.load %arg2[%c7_91, %279, %c0_92] : memref<9x24x128xf32, #tpu.memory_space<vmem>>, vector<1x8x128xf32>
    %281 = vector.shape_cast %280 : vector<1x8x128xf32> to vector<8x128xf32>
    %c8_93 = arith.constant 8 : index
    %282 = arith.index_cast %257 : i32 to index
    %c0_94 = arith.constant 0 : index
    %283 = vector.load %arg2[%c8_93, %282, %c0_94] : memref<9x24x128xf32, #tpu.memory_space<vmem>>, vector<1x8x128xf32>
    %284 = vector.shape_cast %283 : vector<1x8x128xf32> to vector<8x128xf32>
    %c0_95 = arith.constant 0 : index
    %285 = arith.index_cast %257 : i32 to index
    %c0_96 = arith.constant 0 : index
    %286 = vector.load %arg3[%c0_95, %285, %c0_96] : memref<8x24x128xf32, #tpu.memory_space<vmem>>, vector<1x8x128xf32>
    %287 = vector.shape_cast %286 : vector<1x8x128xf32> to vector<8x128xf32>
    %c1_97 = arith.constant 1 : index
    %288 = arith.index_cast %257 : i32 to index
    %c0_98 = arith.constant 0 : index
    %289 = vector.load %arg3[%c1_97, %288, %c0_98] : memref<8x24x128xf32, #tpu.memory_space<vmem>>, vector<1x8x128xf32>
    %290 = vector.shape_cast %289 : vector<1x8x128xf32> to vector<8x128xf32>
    %c2_99 = arith.constant 2 : index
    %291 = arith.index_cast %257 : i32 to index
    %c0_100 = arith.constant 0 : index
    %292 = vector.load %arg3[%c2_99, %291, %c0_100] : memref<8x24x128xf32, #tpu.memory_space<vmem>>, vector<1x8x128xf32>
    %293 = vector.shape_cast %292 : vector<1x8x128xf32> to vector<8x128xf32>
    %c3_101 = arith.constant 3 : index
    %294 = arith.index_cast %257 : i32 to index
    %c0_102 = arith.constant 0 : index
    %295 = vector.load %arg3[%c3_101, %294, %c0_102] : memref<8x24x128xf32, #tpu.memory_space<vmem>>, vector<1x8x128xf32>
    %296 = vector.shape_cast %295 : vector<1x8x128xf32> to vector<8x128xf32>
    %c4_103 = arith.constant 4 : index
    %297 = arith.index_cast %257 : i32 to index
    %c0_104 = arith.constant 0 : index
    %298 = vector.load %arg3[%c4_103, %297, %c0_104] : memref<8x24x128xf32, #tpu.memory_space<vmem>>, vector<1x8x128xf32>
    %299 = vector.shape_cast %298 : vector<1x8x128xf32> to vector<8x128xf32>
    %c5_105 = arith.constant 5 : index
    %300 = arith.index_cast %257 : i32 to index
    %c0_106 = arith.constant 0 : index
    %301 = vector.load %arg3[%c5_105, %300, %c0_106] : memref<8x24x128xf32, #tpu.memory_space<vmem>>, vector<1x8x128xf32>
    %302 = vector.shape_cast %301 : vector<1x8x128xf32> to vector<8x128xf32>
    %c6_107 = arith.constant 6 : index
    %303 = arith.index_cast %257 : i32 to index
    %c0_108 = arith.constant 0 : index
    %304 = vector.load %arg3[%c6_107, %303, %c0_108] : memref<8x24x128xf32, #tpu.memory_space<vmem>>, vector<1x8x128xf32>
    %305 = vector.shape_cast %304 : vector<1x8x128xf32> to vector<8x128xf32>
    %c7_109 = arith.constant 7 : index
    %306 = arith.index_cast %257 : i32 to index
    %c0_110 = arith.constant 0 : index
    %307 = vector.load %arg3[%c7_109, %306, %c0_110] : memref<8x24x128xf32, #tpu.memory_space<vmem>>, vector<1x8x128xf32>
    %308 = vector.shape_cast %307 : vector<1x8x128xf32> to vector<8x128xf32>
    %309 = vector.broadcast %cst_1 : f32 to vector<8x128xf32>
    %310 = arith.cmpf oge, %287, %309 : vector<8x128xf32>
    %311 = arith.select %310, %263, %260 : vector<8x128xi1>, vector<8x128xf32>
    %312 = arith.mulf %266, %266 : vector<8x128xf32>
    %313 = arith.mulf %269, %269 : vector<8x128xf32>
    %314 = arith.addf %312, %313 : vector<8x128xf32>
    %315 = arith.mulf %272, %272 : vector<8x128xf32>
    %316 = arith.addf %314, %315 : vector<8x128xf32>
    %317 = vector.broadcast %cst_2 : f32 to vector<8x128xf32>
    %318 = arith.maximumf %316, %317 : vector<8x128xf32>
    %319 = math.rsqrt %318 : vector<8x128xf32>
    %320 = arith.mulf %275, %275 : vector<8x128xf32>
    %321 = arith.mulf %278, %278 : vector<8x128xf32>
    %322 = arith.addf %320, %321 : vector<8x128xf32>
    %323 = arith.mulf %281, %281 : vector<8x128xf32>
    %324 = arith.addf %322, %323 : vector<8x128xf32>
    %325 = vector.broadcast %cst_2 : f32 to vector<8x128xf32>
    %326 = arith.maximumf %324, %325 : vector<8x128xf32>
    %327 = math.rsqrt %326 : vector<8x128xf32>
    %328 = arith.mulf %316, %319 : vector<8x128xf32>
    %329 = arith.mulf %328, %319 : vector<8x128xf32>
    %330 = arith.mulf %290, %290 : vector<8x128xf32>
    %331 = arith.mulf %293, %293 : vector<8x128xf32>
    %332 = arith.addf %330, %331 : vector<8x128xf32>
    %333 = arith.mulf %296, %296 : vector<8x128xf32>
    %334 = arith.addf %332, %333 : vector<8x128xf32>
    %335 = arith.mulf %266, %290 : vector<8x128xf32>
    %336 = arith.mulf %269, %293 : vector<8x128xf32>
    %337 = arith.addf %335, %336 : vector<8x128xf32>
    %338 = arith.mulf %272, %296 : vector<8x128xf32>
    %339 = arith.addf %337, %338 : vector<8x128xf32>
    %340 = arith.mulf %339, %319 : vector<8x128xf32>
    %341 = arith.addf %329, %334 : vector<8x128xf32>
    %342 = math.absf %340 : vector<8x128xf32>
    %cst_111 = arith.constant 2.000000e+00 : f32
    %343 = vector.broadcast %cst_111 : f32 to vector<8x128xf32>
    %344 = arith.mulf %343, %342 : vector<8x128xf32>
    %345 = arith.subf %341, %344 : vector<8x128xf32>
    %cst_112 = arith.constant 0.000000e+00 : f32
    %346 = vector.broadcast %cst_112 : f32 to vector<8x128xf32>
    %347 = arith.maximumf %345, %346 : vector<8x128xf32>
    %348 = math.sqrt %347 : vector<8x128xf32>
    %349 = arith.mulf %275, %327 : vector<8x128xf32>
    %350 = arith.subf %349, %299 : vector<8x128xf32>
    %351 = arith.mulf %278, %327 : vector<8x128xf32>
    %352 = arith.subf %351, %302 : vector<8x128xf32>
    %353 = arith.mulf %281, %327 : vector<8x128xf32>
    %354 = arith.subf %353, %305 : vector<8x128xf32>
    %355 = arith.mulf %350, %350 : vector<8x128xf32>
    %356 = arith.mulf %352, %352 : vector<8x128xf32>
    %357 = arith.addf %355, %356 : vector<8x128xf32>
    %358 = arith.mulf %354, %354 : vector<8x128xf32>
    %359 = arith.addf %357, %358 : vector<8x128xf32>
    %360 = math.sqrt %359 : vector<8x128xf32>
    %cst_113 = arith.constant 1.000000e-03 : f32
    %361 = vector.broadcast %cst_113 : f32 to vector<8x128xf32>
    %362 = arith.mulf %308, %361 : vector<8x128xf32>
    %cst_114 = arith.constant 0.000000e+00 : f32
    %363 = vector.broadcast %cst_114 : f32 to vector<8x128xf32>
    %364 = arith.cmpf oeq, %362, %363 : vector<8x128xf32>
    %cst_115 = arith.constant 9.99999974E-5 : f32
    %365 = vector.broadcast %cst_115 : f32 to vector<8x128xf32>
    %366 = arith.select %364, %365, %362 : vector<8x128xi1>, vector<8x128xf32>
    %367 = arith.subf %366, %284 : vector<8x128xf32>
    %368 = math.absf %367 : vector<8x128xf32>
    %cst_116 = arith.constant 2.000000e+01 : f32
    %369 = vector.broadcast %cst_116 : f32 to vector<8x128xf32>
    %370 = arith.mulf %366, %369 : vector<8x128xf32>
    %371 = tpu.reciprocal %370 : vector<8x128xf32> -> vector<8x128xf32>
    %372 = arith.mulf %368, %371 : vector<8x128xf32>
    %373 = arith.addf %368, %372 : vector<8x128xf32>
    %374 = arith.addf %248, %311 : vector<8x128xf32>
    %375 = arith.mulf %348, %287 : vector<8x128xf32>
    %376 = arith.addf %250, %375 : vector<8x128xf32>
    %377 = arith.mulf %360, %287 : vector<8x128xf32>
    %378 = arith.addf %252, %377 : vector<8x128xf32>
    %379 = arith.mulf %373, %287 : vector<8x128xf32>
    %380 = arith.addf %254, %379 : vector<8x128xf32>
    %381 = arith.addf %255, %287 : vector<8x128xf32>
    %c3_i32 = arith.constant 3 : i32
    %c0_117 = arith.constant 0 : index
    %c0_118 = arith.constant 0 : index
    %c0_119 = arith.constant 0 : index
    %c0_120 = arith.constant 0 : index
    %382 = vector.load %arg4[%c0_117, %c0_118, %c0_119, %c0_120] : memref<1x5x8x128xf32, #tpu.memory_space<vmem>>, vector<1x1x8x128xf32>
    %383 = vector.shape_cast %382 : vector<1x1x8x128xf32> to vector<8x128xf32>
    %384 = arith.addf %383, %374 : vector<8x128xf32>
    %c0_121 = arith.constant 0 : index
    %c0_122 = arith.constant 0 : index
    %c0_123 = arith.constant 0 : index
    %c0_124 = arith.constant 0 : index
    %385 = vector.load %arg4[%c0_121, %c0_122, %c0_123, %c0_124] : memref<1x5x8x128xf32, #tpu.memory_space<vmem>>, vector<1x1x8x128xf32>
    %386 = vector.shape_cast %385 : vector<1x1x8x128xf32> to vector<8x128xf32>
    %387 = vector.shape_cast %384 : vector<8x128xf32> to vector<1x1x8x128xf32>
    tpu.vector_store %arg4[%c0_121, %c0_122, %c0_123, %c0_124], %387 {strides = array<i32>} : memref<1x5x8x128xf32, #tpu.memory_space<vmem>>, vector<1x1x8x128xf32>,
    %c0_125 = arith.constant 0 : index
    %c1_126 = arith.constant 1 : index
    %c0_127 = arith.constant 0 : index
    %c0_128 = arith.constant 0 : index
    %388 = vector.load %arg4[%c0_125, %c1_126, %c0_127, %c0_128] : memref<1x5x8x128xf32, #tpu.memory_space<vmem>>, vector<1x1x8x128xf32>
    %389 = vector.shape_cast %388 : vector<1x1x8x128xf32> to vector<8x128xf32>
    %390 = arith.addf %389, %376 : vector<8x128xf32>
    %c0_129 = arith.constant 0 : index
    %c1_130 = arith.constant 1 : index
    %c0_131 = arith.constant 0 : index
    %c0_132 = arith.constant 0 : index
    %391 = vector.load %arg4[%c0_129, %c1_130, %c0_131, %c0_132] : memref<1x5x8x128xf32, #tpu.memory_space<vmem>>, vector<1x1x8x128xf32>
    %392 = vector.shape_cast %391 : vector<1x1x8x128xf32> to vector<8x128xf32>
    %393 = vector.shape_cast %390 : vector<8x128xf32> to vector<1x1x8x128xf32>
    tpu.vector_store %arg4[%c0_129, %c1_130, %c0_131, %c0_132], %393 {strides = array<i32>} : memref<1x5x8x128xf32, #tpu.memory_space<vmem>>, vector<1x1x8x128xf32>,
    %c0_133 = arith.constant 0 : index
    %c2_134 = arith.constant 2 : index
    %c0_135 = arith.constant 0 : index
    %c0_136 = arith.constant 0 : index
    %394 = vector.load %arg4[%c0_133, %c2_134, %c0_135, %c0_136] : memref<1x5x8x128xf32, #tpu.memory_space<vmem>>, vector<1x1x8x128xf32>
    %395 = vector.shape_cast %394 : vector<1x1x8x128xf32> to vector<8x128xf32>
    %396 = arith.addf %395, %378 : vector<8x128xf32>
    %c0_137 = arith.constant 0 : index
    %c2_138 = arith.constant 2 : index
    %c0_139 = arith.constant 0 : index
    %c0_140 = arith.constant 0 : index
    %397 = vector.load %arg4[%c0_137, %c2_138, %c0_139, %c0_140] : memref<1x5x8x128xf32, #tpu.memory_space<vmem>>, vector<1x1x8x128xf32>
    %398 = vector.shape_cast %397 : vector<1x1x8x128xf32> to vector<8x128xf32>
    %399 = vector.shape_cast %396 : vector<8x128xf32> to vector<1x1x8x128xf32>
    tpu.vector_store %arg4[%c0_137, %c2_138, %c0_139, %c0_140], %399 {strides = array<i32>} : memref<1x5x8x128xf32, #tpu.memory_space<vmem>>, vector<1x1x8x128xf32>,
    %c0_141 = arith.constant 0 : index
    %c3_142 = arith.constant 3 : index
    %c0_143 = arith.constant 0 : index
    %c0_144 = arith.constant 0 : index
    %400 = vector.load %arg4[%c0_141, %c3_142, %c0_143, %c0_144] : memref<1x5x8x128xf32, #tpu.memory_space<vmem>>, vector<1x1x8x128xf32>
    %401 = vector.shape_cast %400 : vector<1x1x8x128xf32> to vector<8x128xf32>
    %402 = arith.addf %401, %380 : vector<8x128xf32>
    %c0_145 = arith.constant 0 : index
    %c3_146 = arith.constant 3 : index
    %c0_147 = arith.constant 0 : index
    %c0_148 = arith.constant 0 : index
    %403 = vector.load %arg4[%c0_145, %c3_146, %c0_147, %c0_148] : memref<1x5x8x128xf32, #tpu.memory_space<vmem>>, vector<1x1x8x128xf32>
    %404 = vector.shape_cast %403 : vector<1x1x8x128xf32> to vector<8x128xf32>
    %405 = vector.shape_cast %402 : vector<8x128xf32> to vector<1x1x8x128xf32>
    tpu.vector_store %arg4[%c0_145, %c3_146, %c0_147, %c0_148], %405 {strides = array<i32>} : memref<1x5x8x128xf32, #tpu.memory_space<vmem>>, vector<1x1x8x128xf32>,
    %c0_149 = arith.constant 0 : index
    %c4_150 = arith.constant 4 : index
    %c0_151 = arith.constant 0 : index
    %c0_152 = arith.constant 0 : index
    %406 = vector.load %arg4[%c0_149, %c4_150, %c0_151, %c0_152] : memref<1x5x8x128xf32, #tpu.memory_space<vmem>>, vector<1x1x8x128xf32>
    %407 = vector.shape_cast %406 : vector<1x1x8x128xf32> to vector<8x128xf32>
    %408 = arith.addf %407, %381 : vector<8x128xf32>
    %c0_153 = arith.constant 0 : index
    %c4_154 = arith.constant 4 : index
    %c0_155 = arith.constant 0 : index
    %c0_156 = arith.constant 0 : index
    %409 = vector.load %arg4[%c0_153, %c4_154, %c0_155, %c0_156] : memref<1x5x8x128xf32, #tpu.memory_space<vmem>>, vector<1x1x8x128xf32>
    %410 = vector.shape_cast %409 : vector<1x1x8x128xf32> to vector<8x128xf32>
    %411 = vector.shape_cast %408 : vector<8x128xf32> to vector<1x1x8x128xf32>
    tpu.vector_store %arg4[%c0_153, %c4_154, %c0_155, %c0_156], %411 {strides = array<i32>} : memref<1x5x8x128xf32, #tpu.memory_space<vmem>>, vector<1x1x8x128xf32>,
    return
  }
  func.func @transform_0(%arg0: i32, %arg1: i32) -> (i32, i32, i32) {
    %c1_i32 = arith.constant 1 : i32
    %0 = arith.muli %arg0, %c1_i32 : i32
    %1 = arith.addi %0, %arg1 : i32
    %c0_i32 = arith.constant 0 : i32
    %c0_i32_0 = arith.constant 0 : i32
    %c0_i32_1 = arith.constant 0 : i32
    return %c0_i32, %1, %c0_i32_0 : i32, i32, i32
  }
  func.func @transform_1(%arg0: i32, %arg1: i32) -> (i32, i32, i32) {
    %c1_i32 = arith.constant 1 : i32
    %0 = arith.muli %arg0, %c1_i32 : i32
    %1 = arith.addi %0, %arg1 : i32
    %c0_i32 = arith.constant 0 : i32
    %c0_i32_0 = arith.constant 0 : i32
    %c0_i32_1 = arith.constant 0 : i32
    return %c0_i32, %1, %c0_i32_0 : i32, i32, i32
  }
  func.func @transform_2(%arg0: i32, %arg1: i32) -> (i32, i32, i32, i32) {
    %c0_i32 = arith.constant 0 : i32
    %c0_i32_0 = arith.constant 0 : i32
    %c0_i32_1 = arith.constant 0 : i32
    %c0_i32_2 = arith.constant 0 : i32
    return %arg0, %c0_i32, %c0_i32_0, %c0_i32_1 : i32, i32, i32, i32
  }
}

</mosaic_0001>

<bundles_post_ra>
// kernel: pipenet_get_loss.1
= control target key start
LH: loop header
LB: loop body
LE: loop exit
PB: predicated region body
PF: predicated region fallthrough
CT: control target
= control target key end

     0   :  { %s1168_s9 = smov 0   ;;  %s1170_s10 = smov 0   ;;  %s1547_s0 = inlined_call_operand.vmem [shape: f32[9,48,128], index: 0, kind: input, shape index: {}]   ;;  %s1548_s1 = inlined_call_operand.vmem [shape: f32[8,48,128], index: 1, kind: input, shape index: {}]   ;;  %s1549_s2 = inlined_call_operand.vmem [shape: f32[2,5,8,128], index: 2, kind: output, shape index: {}]  }
   0x1   :  { %s1172_s11 = smov 0   ;;  %s1174_s12 = smov 0  }
   0x2   :  { %s1176_s13 = smov 0  }
   0x3 LB: > { %s24_s14 = sadd.s32 1, %s1147_s12  ;;  %p40_p1 = scmp.ne.s32.totalorder %s1139_s10, %s1135_s9  ;;  %s1151_s13 = sphi %s1176_s13, %s12_s13   ;;  %s1147_s12 = sphi %s1174_s12, %s1554_s12   ;;  %s1143_s11 = sphi %s1172_s11, %s1553_s11   ;;  %s1139_s10 = sphi %s1170_s10, %s1552_s10   ;;  %s1135_s9 = sphi %s1168_s9, %s1551_s9  }
   0x4   : > { %p26_p0 = scmp.ge.s32.totalorder %s24_s14, 2  ;;  %p41_p2 = scmp.eq.s32.totalorder %s1151_s13, 0 }
   0x5   : > { %s33_s17 = sadd.s32 1, %s1139_s10  ;;  %p971_p5 = scmp.ge.s32.totalorder %s1151_s13, 2 }
   0x6   : > { %s1556_s14 = smov (%p26_p0, %s24_s14), 0  ;;  %p1199_p3 = por %p41_p2, %p40_p1 }
   0x7   : > { %s30_s16 = ssub.s32 %s1147_s12, %s1556_s14  ;;  %120 = sbr.rel (%p971_p5) target bundleno = 48 (0x30), region = 16 }
   0x8   : > { %p31_p4 = scmp.eq.s32.totalorder %s30_s16, 0 }
   0xa   : > { %s1207_s18 = scalar_select %p31_p4, %s1139_s10, %s33_s17  }
   0xc   : > { %123 = sbr.rel (!%p1199_p3) target bundleno = 31 (0x1f), region = 20  ;;  %s125_s19 = sand.u32 (%p1199_p3), 1, %s1139_s10  }
   0xd   : > { %s1035_s20 = smul.u32 (%p1199_p3), 24, %s1147_s12 }
   0xe   : > { %s1037_s21 = smul.u32 (%p1199_p3), 216, %s125_s19 }
   0xf   : > { %s1217_s24 = scalar_lea.vmem (%p1199_p3), %s1547_s0, %s1035_s20 }
  0x10   : > { %v212_v0 = vld [vmem:[%s1217_s24] sm:$0xff] (%p1199_p3)  ;;  %v214_v1 = vld [vmem:[%s1217_s24 + $0x8] sm:$0xff] (%p1199_p3)  ;;  %v216_v2 = vld [vmem:[%s1217_s24 + $0x10] sm:$0xff] (%p1199_p3)  ;;  %s1222_s25 = scalar_lea.vmem (%p1199_p3), [#allocation2], %s1037_s21 }
  0x11   : > { %213 = vst [vmem:[%s1222_s25] sm:$0xff] %v212_v0  ;;  %215 = vst [vmem:[%s1222_s25 + $0x8] sm:$0xff] %v214_v1  ;;  %v218_v3 = vld [vmem:[%s1217_s24 + $0x30] sm:$0xff]  ;;  %v220_v4 = vld [vmem:[%s1217_s24 + $0x38] sm:$0xff] }
  0x12   : > { %217 = vst [vmem:[%s1222_s25 + $0x10] sm:$0xff] %v216_v2  ;;  %v222_v5 = vld [vmem:[%s1217_s24 + $0x40] sm:$0xff]  ;;  %219 = vst [vmem:[%s1222_s25 + $0x18] sm:$0xff] %v218_v3  ;;  %v226_v7 = vld [vmem:[%s1217_s24 + $0x68] sm:$0xff] }
  0x13   : > { %221 = vst [vmem:[%s1222_s25 + $0x20] sm:$0xff] %v220_v4  ;;  %223 = vst [vmem:[%s1222_s25 + $0x28] sm:$0xff] %v222_v5  ;;  %v224_v6 = vld [vmem:[%s1217_s24 + $0x60] sm:$0xff]  ;;  %v228_v8 = vld [vmem:[%s1217_s24 + $0x70] sm:$0xff] }
  0x14   : > { %225 = vst [vmem:[%s1222_s25 + $0x30] sm:$0xff] %v224_v6  ;;  %227 = vst [vmem:[%s1222_s25 + $0x38] sm:$0xff] %v226_v7  ;;  %v230_v9 = vld [vmem:[%s1217_s24 + $0x90] sm:$0xff]  ;;  %v232_v10 = vld [vmem:[%s1217_s24 + $0x98] sm:$0xff] }
  0x15   : > { %229 = vst [vmem:[%s1222_s25 + $0x40] sm:$0xff] %v228_v8  ;;  %v234_v11 = vld [vmem:[%s1217_s24 + $0xa0] sm:$0xff]  ;;  %231 = vst [vmem:[%s1222_s25 + $0x48] sm:$0xff] %v230_v9  ;;  %v238_v13 = vld [vmem:[%s1217_s24 + $0xc8] sm:$0xff] }
  0x16   : > { %233 = vst [vmem:[%s1222_s25 + $0x50] sm:$0xff] %v232_v10  ;;  %235 = vst [vmem:[%s1222_s25 + $0x58] sm:$0xff] %v234_v11  ;;  %v236_v12 = vld [vmem:[%s1217_s24 + $0xc0] sm:$0xff]  ;;  %v240_v14 = vld [vmem:[%s1217_s24 + $0xd0] sm:$0xff] }
  0x17   : > { %237 = vst [vmem:[%s1222_s25 + $0x60] sm:$0xff] %v236_v12  ;;  %239 = vst [vmem:[%s1222_s25 + $0x68] sm:$0xff] %v238_v13  ;;  %v242_v15 = vld [vmem:[%s1217_s24 + $0xf0] sm:$0xff]  ;;  %v244_v16 = vld [vmem:[%s1217_s24 + $0xf8] sm:$0xff] }
  0x18   : > { %241 = vst [vmem:[%s1222_s25 + $0x70] sm:$0xff] %v240_v14  ;;  %v246_v17 = vld [vmem:[%s1217_s24 + $0x100] sm:$0xff]  ;;  %243 = vst [vmem:[%s1222_s25 + $0x78] sm:$0xff] %v242_v15  ;;  %v250_v19 = vld [vmem:[%s1217_s24 + $0x128] sm:$0xff] }
  0x19   : > { %245 = vst [vmem:[%s1222_s25 + $0x80] sm:$0xff] %v244_v16  ;;  %247 = vst [vmem:[%s1222_s25 + $0x88] sm:$0xff] %v246_v17  ;;  %v248_v18 = vld [vmem:[%s1217_s24 + $0x120] sm:$0xff]  ;;  %v252_v20 = vld [vmem:[%s1217_s24 + $0x130] sm:$0xff] }
  0x1a   : > { %249 = vst [vmem:[%s1222_s25 + $0x90] sm:$0xff] %v248_v18  ;;  %251 = vst [vmem:[%s1222_s25 + $0x98] sm:$0xff] %v250_v19  ;;  %v254_v21 = vld [vmem:[%s1217_s24 + $0x150] sm:$0xff]  ;;  %v256_v22 = vld [vmem:[%s1217_s24 + $0x158] sm:$0xff] }
  0x1b   : > { %253 = vst [vmem:[%s1222_s25 + $0xa0] sm:$0xff] %v252_v20  ;;  %v258_v23 = vld [vmem:[%s1217_s24 + $0x160] sm:$0xff]  ;;  %255 = vst [vmem:[%s1222_s25 + $0xa8] sm:$0xff] %v254_v21  ;;  %v262_v25 = vld [vmem:[%s1217_s24 + $0x188] sm:$0xff] }
  0x1c   : > { %257 = vst [vmem:[%s1222_s25 + $0xb0] sm:$0xff] %v256_v22  ;;  %259 = vst [vmem:[%s1222_s25 + $0xb8] sm:$0xff] %v258_v23  ;;  %v260_v24 = vld [vmem:[%s1217_s24 + $0x180] sm:$0xff]  ;;  %v264_v26 = vld [vmem:[%s1217_s24 + $0x190] sm:$0xff] }
  0x1d   : > { %261 = vst [vmem:[%s1222_s25 + $0xc0] sm:$0xff] %v260_v24  ;;  %263 = vst [vmem:[%s1222_s25 + $0xc8] sm:$0xff] %v262_v25 }
  0x1e   : > { %265 = vst [vmem:[%s1222_s25 + $0xd0] sm:$0xff] %v264_v26 }
  0x1f PF: > { %271 = sbr.rel (!%p1199_p3) target bundleno = 48 (0x30), region = 58  ;;  %s273_s26 = sand.u32 (%p1199_p3), 1, %s1139_s10  }
  0x20   : > { %s1036_s27 = smul.u32 (%p1199_p3), 24, %s1147_s12 }
  0x21   : > { %s1038_s28 = smul.u32 (%p1199_p3), 192, %s273_s26 }
  0x22   : > { %s1282_s3 = scalar_lea.vmem (%p1199_p3), %s1548_s1, %s1036_s27 }
  0x23   : > { %v354_v27 = vld [vmem:[%s1282_s3] sm:$0xff] (%p1199_p3)  ;;  %v356_v28 = vld [vmem:[%s1282_s3 + $0x8] sm:$0xff] (%p1199_p3)  ;;  %v358_v29 = vld [vmem:[%s1282_s3 + $0x10] sm:$0xff] (%p1199_p3)  ;;  %s1287_s4 = scalar_lea.vmem (%p1199_p3), [#allocation3], %s1038_s28 }
  0x24   : > { %355 = vst [vmem:[%s1287_s4] sm:$0xff] %v354_v27  ;;  %357 = vst [vmem:[%s1287_s4 + $0x8] sm:$0xff] %v356_v28  ;;  %v360_v30 = vld [vmem:[%s1282_s3 + $0x30] sm:$0xff]  ;;  %v362_v31 = vld [vmem:[%s1282_s3 + $0x38] sm:$0xff] }
  0x25   : > { %359 = vst [vmem:[%s1287_s4 + $0x10] sm:$0xff] %v358_v29  ;;  %v364_v32 = vld [vmem:[%s1282_s3 + $0x40] sm:$0xff]  ;;  %361 = vst [vmem:[%s1287_s4 + $0x18] sm:$0xff] %v360_v30  ;;  %v368_v34 = vld [vmem:[%s1282_s3 + $0x68] sm:$0xff] }
  0x26   : > { %363 = vst [vmem:[%s1287_s4 + $0x20] sm:$0xff] %v362_v31  ;;  %365 = vst [vmem:[%s1287_s4 + $0x28] sm:$0xff] %v364_v32  ;;  %v366_v33 = vld [vmem:[%s1282_s3 + $0x60] sm:$0xff]  ;;  %v370_v35 = vld [vmem:[%s1282_s3 + $0x70] sm:$0xff] }
  0x27   : > { %367 = vst [vmem:[%s1287_s4 + $0x30] sm:$0xff] %v366_v33  ;;  %369 = vst [vmem:[%s1287_s4 + $0x38] sm:$0xff] %v368_v34  ;;  %v372_v36 = vld [vmem:[%s1282_s3 + $0x90] sm:$0xff]  ;;  %v374_v37 = vld [vmem:[%s1282_s3 + $0x98] sm:$0xff] }
  0x28   : > { %371 = vst [vmem:[%s1287_s4 + $0x40] sm:$0xff] %v370_v35  ;;  %v376_v38 = vld [vmem:[%s1282_s3 + $0xa0] sm:$0xff]  ;;  %373 = vst [vmem:[%s1287_s4 + $0x48] sm:$0xff] %v372_v36  ;;  %v380_v40 = vld [vmem:[%s1282_s3 + $0xc8] sm:$0xff] }
  0x29   : > { %375 = vst [vmem:[%s1287_s4 + $0x50] sm:$0xff] %v374_v37  ;;  %377 = vst [vmem:[%s1287_s4 + $0x58] sm:$0xff] %v376_v38  ;;  %v378_v39 = vld [vmem:[%s1282_s3 + $0xc0] sm:$0xff]  ;;  %v382_v41 = vld [vmem:[%s1282_s3 + $0xd0] sm:$0xff] }
  0x2a   : > { %379 = vst [vmem:[%s1287_s4 + $0x60] sm:$0xff] %v378_v39  ;;  %381 = vst [vmem:[%s1287_s4 + $0x68] sm:$0xff] %v380_v40  ;;  %v384_v42 = vld [vmem:[%s1282_s3 + $0xf0] sm:$0xff]  ;;  %v386_v43 = vld [vmem:[%s1282_s3 + $0xf8] sm:$0xff] }
  0x2b   : > { %383 = vst [vmem:[%s1287_s4 + $0x70] sm:$0xff] %v382_v41  ;;  %v388_v44 = vld [vmem:[%s1282_s3 + $0x100] sm:$0xff]  ;;  %385 = vst [vmem:[%s1287_s4 + $0x78] sm:$0xff] %v384_v42  ;;  %v392_v46 = vld [vmem:[%s1282_s3 + $0x128] sm:$0xff] }
  0x2c   : > { %387 = vst [vmem:[%s1287_s4 + $0x80] sm:$0xff] %v386_v43  ;;  %389 = vst [vmem:[%s1287_s4 + $0x88] sm:$0xff] %v388_v44  ;;  %v390_v45 = vld [vmem:[%s1282_s3 + $0x120] sm:$0xff]  ;;  %v394_v47 = vld [vmem:[%s1282_s3 + $0x130] sm:$0xff] }
  0x2d   : > { %391 = vst [vmem:[%s1287_s4 + $0x90] sm:$0xff] %v390_v45  ;;  %393 = vst [vmem:[%s1287_s4 + $0x98] sm:$0xff] %v392_v46  ;;  %v396_v48 = vld [vmem:[%s1282_s3 + $0x150] sm:$0xff]  ;;  %v398_v49 = vld [vmem:[%s1282_s3 + $0x158] sm:$0xff] }
  0x2e   : > { %395 = vst [vmem:[%s1287_s4 + $0xa0] sm:$0xff] %v394_v47  ;;  %v400_v50 = vld [vmem:[%s1282_s3 + $0x160] sm:$0xff]  ;;  %397 = vst [vmem:[%s1287_s4 + $0xa8] sm:$0xff] %v396_v48 }
  0x2f   : > { %399 = vst [vmem:[%s1287_s4 + $0xb0] sm:$0xff] %v398_v49  ;;  %401 = vst [vmem:[%s1287_s4 + $0xb8] sm:$0xff] %v400_v50 }
  0x30 PF: > { %p974_p6 = scmp.ge.s32.totalorder %s1151_s13, 1  ;;  %p406_p7 = scmp.lt.s32.totalorder %s1151_s13, 3 }
  0x32   : > { %p407_p8 = pnand %p974_p6, %p406_p7 }
  0x33   : > { %p449_p9 = scmp.lt.s32.totalorder (!%p407_p8), %s1143_s11, 1  ;;  %s413_s5 = sand.u32 (!%p407_p8), 1, %s1135_s9  }
  0x34   : > { %410 = sbr.rel (%p407_p8) target bundleno = 133 (0x85), region = 96 }
  0x35   : > { %s1039_s6 = smul.u32 (!%p407_p8), 216, %s413_s5 }
  0x36   : > { %s1040_s7 = smul.u32 (!%p407_p8), 192, %s413_s5 }
  0x37   : > { %s1341_s8 = scalar_lea.vmem (!%p407_p8), [#allocation2], %s1039_s6 }
  0x38   : > { %s1349_s9 = scalar_lea.vmem (!%p407_p8), [#allocation3], %s1040_s7 }
  0x39   : > { %s1558_s11 = smov (!%p449_p9, %s1143_s11), 1  ;;  %v463_v51 = vld [vmem:[%s1341_s8] sm:$0xff]  ;;  %v976_v52 = vld [vmem:[%s1341_s8 + $0x18] sm:$0xff]  ;;  %v991_v53 = vld [vmem:[%s1341_s8 + $0x8] sm:$0xff] }
  0x3a   : > { %v992_v54 = vld [vmem:[%s1341_s8 + $0x20] sm:$0xff]  ;;  %v1008_v55 = vld [vmem:[%s1341_s8 + $0x10] sm:$0xff]  ;;  %v1009_v56 = vld [vmem:[%s1341_s8 + $0x28] sm:$0xff]  ;;  %s1041_s15 = smul.u32 40, %s1558_s11 }
  0x3b   : > { %v1352_v57 = vld [vmem:[%s1349_s9] sm:$0xff]  ;;  %v1355_v58 = vld [vmem:[%s1349_s9 + $0x8] sm:$0xff]  ;;  %v1358_v59 = vld [vmem:[%s1349_s9 + $0x10] sm:$0xff] }
  0x3c   : > { %vm503_vm0 = vcmp.ge.f32.partialorder %v1352_v57, 0.5  ;;  %vm621_vm1 = vcmp.ge.f32.partialorder %v1355_v58, 0.5  ;;  %vm739_vm2 = vcmp.ge.f32.partialorder %v1358_v59, 0.5  ;;  %v977_v60 = vld [vmem:[%s1341_s8 + $0x30] sm:$0xff]  ;;  %v978_v61 = vld [vmem:[%s1341_s8 + $0x48] sm:$0xff]  ;;  %v979_v62 = vld [vmem:[%s1341_s8 + $0x60] sm:$0xff]  ;;  %s1376_s17 = scalar_lea.vmem %s1549_s2, %s1041_s15  ;;  %v696_v46 = vadd.f32 %v1355_v58, %v1352_v57 }
  0x3d   : > { %v504_v63 = vsel %vm503_vm0, %v976_v52, %v463_v51  ;;  %v622_v0 = vsel %vm621_vm1, %v992_v54, %v991_v53  ;;  %v740_v1 = vsel %vm739_vm2, %v1009_v56, %v1008_v55  ;;  %v984_v2 = vld [vmem:[%s1349_s9 + $0x18] sm:$0xff]  ;;  %v985_v3 = vld [vmem:[%s1349_s9 + $0x30] sm:$0xff]  ;;  %v505_v4 = vmul.f32 %v977_v60, %v977_v60  ;;  %v993_v8 = vld [vmem:[%s1341_s8 + $0x38] sm:$0xff] }
  0x3e   : > { %v689_v5 = vadd.f32 %v622_v0, %v504_v63  ;;  %v506_v6 = vmul.f32 %v978_v61, %v978_v61  ;;  %v508_v7 = vmul.f32 %v979_v62, %v979_v62  ;;  %v994_v9 = vld [vmem:[%s1341_s8 + $0x50] sm:$0xff]  ;;  %v995_v10 = vld [vmem:[%s1341_s8 + $0x68] sm:$0xff]  ;;  %v526_v11 = vmul.f32 %v984_v2, %v977_v60  ;;  %v986_v14 = vld [vmem:[%s1349_s9 + $0x48] sm:$0xff] }
  0x3f   : > { %v527_v12 = vmul.f32 %v985_v3, %v978_v61  ;;  %v623_v16 = vmul.f32 %v993_v8, %v993_v8  ;;  %v1001_v17 = vld [vmem:[%s1349_s9 + $0x20] sm:$0xff]  ;;  %v624_v18 = vmul.f32 %v994_v9, %v994_v9  ;;  %v626_v19 = vmul.f32 %v995_v10, %v995_v10  ;;  %v1002_v22 = vld [vmem:[%s1349_s9 + $0x38] sm:$0xff]  ;;  %v1010_v23 = vld [vmem:[%s1341_s8 + $0x40] sm:$0xff] }
  0x40   : > { %v807_v13 = vadd.f32 %v740_v1, %v689_v5  ;;  %v507_v15 = vadd.f32 %v506_v6, %v505_v4  ;;  %v521_v21 = vmul.f32 %v984_v2, %v984_v2  ;;  %v1011_v24 = vld [vmem:[%s1341_s8 + $0x58] sm:$0xff]  ;;  %v522_v25 = vmul.f32 %v985_v3, %v985_v3  ;;  %v1385_v29 = vld [vmem:[%s1341_s8 + $0x70] sm:$0xff]  ;;  %v1003_v38 = vld [vmem:[%s1349_s9 + $0x50] sm:$0xff] }
  0x41   : > { %v528_v26 = vadd.f32 %v527_v12, %v526_v11  ;;  %v529_v27 = vmul.f32 %v986_v14, %v979_v62  ;;  %v625_v28 = vadd.f32 %v624_v18, %v623_v16  ;;  %v639_v31 = vmul.f32 %v1001_v17, %v1001_v17  ;;  %v1398_v43 = vld [vmem:[%s1341_s8 + $0x78] sm:$0xff]  ;;  %v1401_v44 = vld [vmem:[%s1341_s8 + $0x90] sm:$0xff]  ;;  %v1404_v45 = vld [vmem:[%s1341_s8 + $0xa8] sm:$0xff] }
  0x42   : > { %v1379_v20 = vadd.f32 %v508_v7, %v507_v15  ;;  %817 = vst [vmem:[%s1376_s17] sm:$0xff] %v807_v13  ;;  %v640_v32 = vmul.f32 %v1002_v22, %v1002_v22  ;;  %v644_v33 = vmul.f32 %v1001_v17, %v993_v8  ;;  %v645_v35 = vmul.f32 %v1002_v22, %v994_v9  ;;  %v1018_v51 = vld [vmem:[%s1349_s9 + $0x28] sm:$0xff]  ;;  %v1019_v56 = vld [vmem:[%s1349_s9 + $0x40] sm:$0xff]  ;;  %v1424_v62 = vld [vmem:[%s1341_s8 + $0x88] sm:$0xff] }
  0x43   : > { %v1389_v34 = vadd.f32 %v626_v19, %v625_v28  ;;  %v741_v36 = vmul.f32 %v1010_v23, %v1010_v23  ;;  %v742_v37 = vmul.f32 %v1011_v24, %v1011_v24  ;;  %v744_v39 = vmul.f32 %v1385_v29, %v1385_v29  ;;  %v1412_v52 = vld [vmem:[%s1341_s8 + $0x80] sm:$0xff]  ;;  %v1415_v53 = vld [vmem:[%s1341_s8 + $0x98] sm:$0xff]  ;;  %v1421_v61 = vld [vmem:[%s1341_s8 + $0xb0] sm:$0xff] }
  0x44   : > { %v510_v30 = vmax.f32 %v1379_v20, 1e-24  ;;  %v1394_v40 = vmul.f32 %v986_v14, %v986_v14  ;;  %v523_v47 = vadd.f32 %v522_v25, %v521_v21  ;;  %v530_v48 = vadd.f32 %v529_v27, %v528_v26  ;;  %v1433_v3 = vld [vmem:[%s1341_s8 + $0xa0] sm:$0xff]  ;;  %v1436_v4 = vld [vmem:[%s1341_s8 + $0xb8] sm:$0xff]  ;;  %v1024_v11 = vld [vmem:[%s1349_s9 + $0xb8] sm:$0xff] }
  0x45   : > { %v628_v41 = vmax.f32 %v1389_v34, 1e-24  ;;  %v743_v42 = vadd.f32 %v742_v37, %v741_v36  ;;  %v1408_v49 = vadd.f32 %v640_v32, %v639_v31  ;;  %v642_v50 = vmul.f32 %v1003_v38, %v1003_v38  ;;  %v990_v9 = vld [vmem:[%s1349_s9 + $0xa8] sm:$0xff]  ;;  %v1020_v25 = vld [vmem:[%s1349_s9 + $0x58] sm:$0xff] }
  0x46   : > { %1083 = vrsqrt.f32 %v510_v30  ;;  %v646_v54 = vadd.f32 %v645_v35, %v644_v33  ;;  %v647_v55 = vmul.f32 %v1003_v38, %v995_v10  ;;  %v757_v63 = vmul.f32 %v1018_v51, %v1018_v51  ;;  %v1007_v10 = vld [vmem:[%s1349_s9 + $0xb0] sm:$0xff] }
  0x47   : > { %1085 = vrsqrt.f32 %v628_v41  ;;  %v1418_v60 = vadd.f32 %v744_v39, %v743_v42  ;;  %v512_v0 = vmul.f32 %v1398_v43, %v1398_v43  ;;  %v513_v1 = vmul.f32 %v1401_v44, %v1401_v44 }
  0x48   : > { %v515_v2 = vmul.f32 %v1404_v45, %v1404_v45  ;;  %v762_v6 = vmul.f32 %v1018_v51, %v1010_v23  ;;  %v630_v7 = vmul.f32 %v1412_v52, %v1412_v52  ;;  %v631_v8 = vmul.f32 %v1415_v53, %v1415_v53 }
  0x49   : > { %v746_v5 = vmax.f32 %v1418_v60, 1e-24  ;;  %v763_v12 = vmul.f32 %v1019_v56, %v1011_v24  ;;  %v514_v13 = vadd.f32 %v513_v1, %v512_v0  ;;  %v633_v14 = vmul.f32 %v1421_v61, %v1421_v61 }
  0x4a   : > { %v748_v15 = vmul.f32 %v1424_v62, %v1424_v62  ;;  %v632_v16 = vadd.f32 %v631_v8, %v630_v7  ;;  %v749_v17 = vmul.f32 %v1433_v3, %v1433_v3  ;;  %v751_v18 = vmul.f32 %v1436_v4, %v1436_v4 }
  0x4b   : > { %1087 = vrsqrt.f32 %v746_v5  ;;  %v516_v19 = vadd.f32 %v515_v2, %v514_v13  ;;  %v562_v21 = vmul.f32 0.001, %v990_v9  ;;  %v680_v22 = vmul.f32 0.001, %v1007_v10  ;;  %v983_v9 = vld [vmem:[%s1341_s8 + $0xc0] sm:$0xff]  ;;  %v999_v13 = vld [vmem:[%s1341_s8 + $0xc8] sm:$0xff] }
  0x4c   : > { %v798_v23 = vmul.f32 0.001, %v1024_v11  ;;  %v648_v24 = vadd.f32 %v647_v55, %v646_v54  ;;  %v758_v26 = vmul.f32 %v1019_v56, %v1019_v56  ;;  %v634_v27 = vadd.f32 %v633_v14, %v632_v16 }
  0x4d   : > { %v750_v28 = vadd.f32 %v749_v17, %v748_v15  ;;  %v517_v30 = vmax.f32 %v516_v19, 1e-24  ;;  %vm563_vm3 = vcmp.eq.f32.partialorder %v562_v21, 0.0  ;;  %vm681_vm4 = vcmp.eq.f32.partialorder %v680_v22, 0.0 }
  0x4e   : > { %vm799_vm5 = vcmp.eq.f32.partialorder %v798_v23, 0.0  ;;  %v635_v31 = vmax.f32 %v634_v27, 1e-24  ;;  %v1455_v33 = vsel %vm563_vm3, 0.0001, %v562_v21  ;;  %v764_v36 = vadd.f32 %v763_v12, %v762_v6 }
  0x4f   : > { %v752_v32 = vadd.f32 %v751_v18, %v750_v28  ;;  %v1457_v35 = vsel %vm681_vm4, 0.0001, %v680_v22  ;;  %v765_v37 = vmul.f32 %v1020_v25, %v1385_v29  ;;  %1089 = vrsqrt.f32 %v517_v30  ;;  %v988_v28 = vld [vmem:[%s1349_s9 + $0x78] sm:$0xff]  ;;  %v989_v30 = vld [vmem:[%s1349_s9 + $0x90] sm:$0xff] }
  0x50   : > { %v814_v38 = vadd.f32 %v1358_v59, %v696_v46  ;;  %1091 = vrsqrt.f32 %v635_v31  ;;  %v567_v42 = vmul.f32 20.0, %v1455_v33  ;;  %v1462_v51 = vsel %vm799_vm5, 0.0001, %v798_v23  ;;  %v1016_v23 = vld [vmem:[%s1341_s8 + $0xd0] sm:$0xff] }
  0x51   : > { %v753_v41 = vmax.f32 %v752_v32, 1e-24  ;;  %v525_v55 = vadd.f32 %v1394_v40, %v523_v47  ;;  %v685_v0 = vmul.f32 20.0, %v1457_v35  ;;  %v643_v29 = vadd.f32 %v642_v50, %v1408_v49 }
  0x52   : > { %v760_v1 = vmul.f32 %v1020_v25, %v1020_v25  ;;  %v803_v46 = vmul.f32 20.0, %v1462_v51  ;;  %v759_v7 = vadd.f32 %v758_v26, %v757_v63  ;;  %v766_v40 = vadd.f32 %v765_v37, %v764_v36  ;;  %1032 = vst [vmem:[%s1376_s17 + $0x20] sm:$0xff] %v814_v38 }
  0x53   : > { %v1084_v39 = vpop.eup %1083  ;;  %1093 = vrsqrt.f32 %v753_v41  ;;  %v565_v17 = vsub.f32 %v1455_v33, %v983_v9  ;;  %v683_v22 = vsub.f32 %v1457_v35, %v999_v13  ;;  %v801_v36 = vsub.f32 %v1462_v51, %v1016_v23 }
  0x54   : > { %v519_v54 = vmul.f32 %v1084_v39, %v1379_v20  ;;  %v531_v56 = vmul.f32 %v1084_v39, %v530_v48  ;;  %v1086_v2 = vpop.eup %1085  ;;  %1095 = vrcp.f32 %v567_v42  ;;  %v761_v12 = vadd.f32 %v760_v1, %v759_v7 }
  0x55   : > { %v637_v20 = vmul.f32 %v1086_v2, %v1389_v34  ;;  %v649_v8 = vmul.f32 %v1086_v2, %v648_v24  ;;  %1097 = vrcp.f32 %v685_v0  ;;  %v566_v37 = vand.u32 2147483647, %v565_v17  ;;  %v1005_v0 = vld [vmem:[%s1349_s9 + $0x80] sm:$0xff] }
  0x56   : > { %v520_v5 = vmul.f32 %v1084_v39, %v519_v54  ;;  %v533_v6 = vand.u32 2147483647, %v531_v56  ;;  %1099 = vrcp.f32 %v803_v46  ;;  %v684_v38 = vand.u32 2147483647, %v683_v22  ;;  %v1004_v56 = vld [vmem:[%s1349_s9 + $0x68] sm:$0xff] }
  0x57   : > { %v638_v49 = vmul.f32 %v1086_v2, %v637_v20  ;;  %v651_v50 = vand.u32 2147483647, %v649_v8  ;;  %v802_v7 = vand.u32 2147483647, %v801_v36 }
  0x58   : > { %v532_v47 = vadd.f32 %v525_v55, %v520_v5  ;;  %v534_v48 = vmul.f32 2.0, %v533_v6  ;;  %v1088_v10 = vpop.eup %1087  ;;  %v1021_v6 = vld [vmem:[%s1349_s9 + $0x70] sm:$0xff] }
  0x59   : > { %v650_v63 = vadd.f32 %v643_v29, %v638_v49  ;;  %v652_v14 = vmul.f32 2.0, %v651_v50  ;;  %v755_v34 = vmul.f32 %v1088_v10, %v1418_v60  ;;  %v767_v15 = vmul.f32 %v1088_v10, %v766_v40  ;;  %v987_v60 = vld [vmem:[%s1349_s9 + $0x60] sm:$0xff]  ;;  %v1006_v29 = vld [vmem:[%s1349_s9 + $0x98] sm:$0xff]  ;;  %v1022_v49 = vld [vmem:[%s1349_s9 + $0x88] sm:$0xff] }
  0x5a   : > { %v535_v11 = vsub.f32 %v532_v47, %v534_v48  ;;  %v1023_v50 = vld [vmem:[%s1349_s9 + $0xa0] sm:$0xff] }
  0x5b   : > { %v653_v18 = vsub.f32 %v650_v63, %v652_v14  ;;  %v756_v19 = vmul.f32 %v1088_v10, %v755_v34  ;;  %v769_v21 = vand.u32 2147483647, %v767_v15 }
  0x5c   : > { %v1474_v16 = vmax.f32 %v535_v11, 0.0  ;;  %v1090_v24 = vpop.eup %1089 }
  0x5d   : > { %v1480_v25 = vmax.f32 %v653_v18, 0.0  ;;  %v768_v26 = vadd.f32 %v761_v12, %v756_v19  ;;  %v770_v27 = vmul.f32 2.0, %v769_v21  ;;  %v1092_v31 = vpop.eup %1091  ;;  %v544_v32 = vmul.f32 %v1090_v24, %v1398_v43 }
  0x5e   : > { %1101 = vrsqrt.f32 %v1474_v16  ;;  %v546_v33 = vmul.f32 %v1090_v24, %v1401_v44  ;;  %v548_v35 = vmul.f32 %v1090_v24, %v1404_v45  ;;  %v662_v43 = vmul.f32 %v1092_v31, %v1412_v52 }
  0x5f   : > { %1103 = vrsqrt.f32 %v1480_v25  ;;  %v771_v41 = vsub.f32 %v768_v26, %v770_v27  ;;  %v545_v42 = vsub.f32 %v544_v32, %v987_v60  ;;  %v664_v44 = vmul.f32 %v1092_v31, %v1415_v53 }
  0x60   : > { %v1094_v39 = vpop.eup %1093  ;;  %v547_v54 = vsub.f32 %v546_v33, %v988_v28  ;;  %v549_v55 = vsub.f32 %v548_v35, %v989_v30  ;;  %v666_v45 = vmul.f32 %v1092_v31, %v1421_v61  ;;  %v663_v40 = vsub.f32 %v662_v43, %v1004_v56 }
  0x61   : > { %v780_v51 = vmul.f32 %v1094_v39, %v1424_v62  ;;  %v1096_v1 = vpop.eup %1095  ;;  %v1497_v46 = vmax.f32 %v771_v41, 0.0  ;;  %v550_v2 = vmul.f32 %v545_v42, %v545_v42  ;;  %v665_v47 = vsub.f32 %v664_v44, %v1005_v0 }
  0x62   : > { %v551_v5 = vmul.f32 %v547_v54, %v547_v54  ;;  %v1098_v20 = vpop.eup %1097  ;;  %v553_v8 = vmul.f32 %v549_v55, %v549_v55  ;;  %v667_v52 = vsub.f32 %v666_v45, %v1006_v29  ;;  %v668_v61 = vmul.f32 %v663_v40, %v663_v40 }
  0x63   : > { %v1100_v48 = vpop.eup %1099  ;;  %1105 = vrsqrt.f32 %v1497_v46  ;;  %v669_v62 = vmul.f32 %v665_v47, %v665_v47  ;;  %v781_v9 = vsub.f32 %v780_v51, %v1021_v6  ;;  %v782_v11 = vmul.f32 %v1094_v39, %v1433_v3 }
  0x64   : > { %v552_v53 = vadd.f32 %v551_v5, %v550_v2  ;;  %v671_v10 = vmul.f32 %v667_v52, %v667_v52  ;;  %v784_v12 = vmul.f32 %v1094_v39, %v1436_v4  ;;  %v569_v13 = vmul.f32 %v1096_v1, %v566_v37 }
  0x65   : > { %v670_v14 = vadd.f32 %v669_v62, %v668_v61  ;;  %v687_v34 = vmul.f32 %v1098_v20, %v684_v38  ;;  %v805_v15 = vmul.f32 %v1100_v48, %v802_v7  ;;  %v783_v17 = vsub.f32 %v782_v11, %v1022_v49 }
  0x66   : > { %v554_v63 = vadd.f32 %v553_v8, %v552_v53  ;;  %v785_v18 = vsub.f32 %v784_v12, %v1023_v50  ;;  %v570_v19 = vadd.f32 %v569_v13, %v566_v37  ;;  %vm539_vm6 = vcmp.eq.f32.partialorder %v1474_v16, inf }
  0x67   : > { %v542_v22 = vand.u32 2147483648, %v1474_v16  ;;  %v786_v23 = vmul.f32 %v781_v9, %v781_v9  ;;  %vm541_vm7 = vcmp.eq.f32.partialorder %v1474_v16, 0.0  ;;  %v672_v3 = vadd.f32 %v671_v10, %v670_v14 }
  0x68   : > { %1107 = vrsqrt.f32 %v554_v63  ;;  %v787_v4 = vmul.f32 %v783_v17, %v783_v17  ;;  %vm657_vm8 = vcmp.eq.f32.partialorder %v1480_v25, inf  ;;  %v789_v26 = vmul.f32 %v785_v18, %v785_v18 }
  0x69   : > { %v688_v27 = vadd.f32 %v687_v34, %v684_v38  ;;  %v806_v60 = vadd.f32 %v805_v15, %v802_v7  ;;  %v660_v31 = vand.u32 2147483648, %v1480_v25  ;;  %1109 = vrsqrt.f32 %v672_v3 }
  0x6a   : > { %v576_v32 = vmul.f32 %v570_v19, %v1352_v57  ;;  %vm659_vm9 = vcmp.eq.f32.partialorder %v1480_v25, 0.0  ;;  %v788_v36 = vadd.f32 %v787_v4, %v786_v23  ;;  %vm775_vm10 = vcmp.eq.f32.partialorder %v1497_v46, inf }
  0x6b   : > { %v1102_v21 = vpop.eup %1101  ;;  %v694_v37 = vmul.f32 %v1355_v58, %v688_v27  ;;  %v812_v39 = vmul.f32 %v1358_v59, %v806_v60  ;;  %v778_v0 = vand.u32 2147483648, %v1497_v46  ;;  %vm777_vm11 = vcmp.eq.f32.partialorder %v1497_v46, 0.0 }
  0x6c   : > { %v538_v24 = vmul.f32 %v1102_v21, %v1474_v16  ;;  %v1104_v28 = vpop.eup %1103  ;;  %v790_v41 = vadd.f32 %v789_v26, %v788_v36  ;;  %vm557_vm12 = vcmp.eq.f32.partialorder %v554_v63, inf  ;;  %v560_v2 = vand.u32 2147483648, %v554_v63 }
  0x6d   : > { %v656_v35 = vmul.f32 %v1104_v28, %v1480_v25  ;;  %v695_v54 = vadd.f32 %v694_v37, %v576_v32  ;;  %vm559_vm13 = vcmp.eq.f32.partialorder %v554_v63, 0.0  ;;  %vm675_vm14 = vcmp.eq.f32.partialorder %v672_v3, inf }
  0x6e   : > { %v540_v30 = vsel %vm539_vm6, %v1474_v16, %v538_v24  ;;  %1111 = vrsqrt.f32 %v790_v41  ;;  %v678_v8 = vand.u32 2147483648, %v672_v3  ;;  %vm677_vm15 = vcmp.eq.f32.partialorder %v672_v3, 0.0 }
  0x6f   : > { %v543_v33 = vsel %vm541_vm7, %v542_v22, %v540_v30  ;;  %v658_v38 = vsel %vm657_vm8, %v1480_v25, %v656_v35  ;;  %v813_v43 = vadd.f32 %v812_v39, %v695_v54  ;;  %vm793_vm0 = vcmp.eq.f32.partialorder %v790_v41, inf }
  0x70   : > { %v572_v16 = vmul.f32 %v543_v33, %v1352_v57  ;;  %v661_v42 = vsel %vm659_vm9, %v660_v31, %v658_v38  ;;  %v1106_v55 = vpop.eup %1105  ;;  %v796_v62 = vand.u32 2147483648, %v790_v41  ;;  %vm795_vm1 = vcmp.eq.f32.partialorder %v790_v41, 0.0 }
  0x71   : > { %v690_v56 = vmul.f32 %v1355_v58, %v661_v42  ;;  %v774_v29 = vmul.f32 %v1106_v55, %v1497_v46  ;;  %1030 = vst [vmem:[%s1376_s17 + $0x18] sm:$0xff] %v813_v43 }
  0x73   : > { %v691_v25 = vadd.f32 %v690_v56, %v572_v16  ;;  %v776_v44 = vsel %vm775_vm10, %v1497_v46, %v774_v29 }
  0x74   : > { %v779_v45 = vsel %vm777_vm11, %v778_v0, %v776_v44 }
  0x75   : > { %v1108_v51 = vpop.eup %1107  ;;  %v808_v1 = vmul.f32 %v1358_v59, %v779_v45 }
  0x76   : > { %v556_v5 = vmul.f32 %v1108_v51, %v554_v63  ;;  %v1110_v7 = vpop.eup %1109 }
  0x77   : > { %v809_v6 = vadd.f32 %v808_v1, %v691_v25  ;;  %v674_v47 = vmul.f32 %v1110_v7, %v672_v3 }
  0x78   : > { %v558_v20 = vsel %vm557_vm12, %v554_v63, %v556_v5 }
  0x79   : > { %v561_v40 = vsel %vm559_vm13, %v560_v2, %v558_v20  ;;  %1026 = vst [vmem:[%s1376_s17 + $0x8] sm:$0xff] %v809_v6  ;;  %v676_v46 = vsel %vm675_vm14, %v672_v3, %v674_v47 }
  0x7a   : > { %v574_v52 = vmul.f32 %v561_v40, %v1352_v57  ;;  %v679_v48 = vsel %vm677_vm15, %v678_v8, %v676_v46 }
  0x7b   : > { %v1112_v53 = vpop.eup %1111  ;;  %v692_v61 = vmul.f32 %v1355_v58, %v679_v48 }
  0x7c   : > { %v792_v49 = vmul.f32 %v1112_v53, %v790_v41 }
  0x7d   : > { %v693_v50 = vadd.f32 %v692_v61, %v574_v52 }
  0x7e   : > { %v794_v9 = vsel %vm793_vm0, %v790_v41, %v792_v49 }
  0x7f   : > { %v797_v10 = vsel %vm795_vm1, %v796_v62, %v794_v9 }
  0x80   : > { %v810_v11 = vmul.f32 %v1358_v59, %v797_v10 }
  0x82   : > { %v811_v12 = vadd.f32 %v810_v11, %v693_v50 }
  0x84   : > { %1028 = vst [vmem:[%s1376_s17 + $0x10] sm:$0xff] %v811_v12 }
  0x85 PF: > { %s12_s13 = sadd.s32 1, %s1151_s13   ;;  %s1551_s9 = smov %s1139_s10 }
  0x86   : > { %p9_p10 = scmp.ge.s32.totalorder %s12_s13, 4   ;;  %s1552_s10 = smov %s1207_s18 }
  0x87   : > { %s1553_s11 = smov %s1147_s12  ;;  %s1554_s12 = smov %s1556_s14 }
  0x88   :  { %11 = sbr.rel (!%p9_p10) target bundleno = 3 (0x3), region = 204 }

</bundles_post_ra>
